<compile_context>
chip_gen: v5e
topology: v5e:2x2
jax: 0.10.0
libtpu: 0.0.40
codegen_flags: <defaults>
</compile_context>

<pallas_src>
import functools
import math
from typing import NamedTuple

import jax
import jax.numpy as jnp
from jax.experimental import pallas as pl
from jax.experimental.pallas import tpu as pltpu

EPS = 1e-5                       # nn.LayerNorm default eps
_MiB = 1024 * 1024
_VMEM_MARGIN = 8 * _MiB          # headroom for Mosaic-internal scratch
_ROW_CAP = 4096                  # HBM-bound: big tiles amortize ~0.35us/step overhead
_MIN_BALANCE_ROWS = 512
_MIN_PAR_STEPS = 8               # v7x shards the 'parallel' axis over 2 TensorCores


# ---------------------------------------------------------------------------
# Kernel bodies.
# ---------------------------------------------------------------------------
def _layernorm_f32(x):
    mean = jnp.mean(x, axis=-1, keepdims=True)
    xc = x - mean
    var = jnp.mean(xc * xc, axis=-1, keepdims=True)     # two-pass: no cancellation
    return xc * jax.lax.rsqrt(var + EPS)


def _ln_expand_flat_kernel(x_ref, w_ref, b_ref, o_ref):
    # x: (tm, C)   w: (C, C2) bf16 (gamma folded)   b: (1, C2) f32   o: (tm, C2)
    y = _layernorm_f32(x_ref[...].astype(jnp.float32)).astype(jnp.bfloat16)
    acc = jnp.dot(y, w_ref[...], preferred_element_type=jnp.float32)
    o_ref[...] = (acc + b_ref[...]).astype(o_ref.dtype)


def _ln_expand_fused_kernel(x_ref, w_ref, b_ref, o_ref):
    # x: (tm, C)   w: (r, C, r*Cout) bf16   b: (r, 1, r*Cout) f32
    # o: (ng, Wq, r*Cout) -- the p1 half of the rearrange is grid axis 1.
    p = pl.program_id(1)
    y = _layernorm_f32(x_ref[...].astype(jnp.float32)).astype(jnp.bfloat16)
    acc = jnp.dot(y, w_ref[p], preferred_element_type=jnp.float32) + b_ref[p]
    ng, wq, k = o_ref.shape
    # free reshape when Wq % 8 == 0 (enforced by the auto path selection)
    o_ref[...] = acc.reshape(ng, wq, k).astype(o_ref.dtype)


# ---------------------------------------------------------------------------
# VMEM budget / tiling helpers.
# ---------------------------------------------------------------------------
@functools.lru_cache(maxsize=None)
def _physical_vmem_bytes():
    cap = 64 * _MiB                       # conservative default (v7x per-TC)
    try:                                  # narrow probe of optional introspection API
        q = int(getattr(pltpu.get_tpu_info(), "vmem_capacity_bytes", 0) or 0)
        if q > 0:
            cap = q
    except Exception:
        pass
    return int(min(cap, 128 * _MiB))


def _choose_rows(n_rows, per_row_bytes, const_bytes, quantum):
    """Largest row tile (multiple of `quantum`, <= _ROW_CAP) fitting the budget."""
    budget = int(_physical_vmem_bytes() * 0.75) - _VMEM_MARGIN - const_bytes
    budget = max(budget, per_row_bytes * quantum)
    tm = min(_ROW_CAP, budget // per_row_bytes, n_rows)
    if tm >= n_rows:
        return int(n_rows)                              # full extent: always legal
    tm = max(quantum, (int(tm) // quantum) * quantum)
    floor_rows = max(quantum, min(_MIN_BALANCE_ROWS, n_rows))
    # v7x: keep >= 8 steps on the parallel axis when M is big enough.
    while tm >= 2 * quantum and tm > floor_rows and pl.cdiv(n_rows, tm) < _MIN_PAR_STEPS:
        tm = max(quantum, ((tm // 2) // quantum) * quantum)
    return int(min(tm, n_rows))


def _vmem_limit(const_bytes, per_row_bytes, tm):
    need = const_bytes + per_row_bytes * tm + _VMEM_MARGIN
    return int(min(_physical_vmem_bytes(), max(16 * _MiB, need)))


# ---------------------------------------------------------------------------
# pallas_call builders (cached per static configuration).
# ---------------------------------------------------------------------------
@functools.lru_cache(maxsize=None)
def _build_flat(M, C, C2, tm, out_dtype_name, vmem_limit):
    return pl.pallas_call(
        _ln_expand_flat_kernel,
        out_shape=jax.ShapeDtypeStruct((M, C2), jnp.dtype(out_dtype_name)),
        grid_spec=pltpu.PrefetchScalarGridSpec(
            num_scalar_prefetch=0,
            grid=(pl.cdiv(M, tm),),                       # masked tail if tm !| M
            in_specs=[
                pl.BlockSpec((tm, C), lambda i: (i, 0)),
                pl.BlockSpec((C, C2), lambda i: (0, 0)),  # grid-invariant weight
                pl.BlockSpec((1, C2), lambda i: (0, 0)),  # grid-invariant bias
            ],
            out_specs=pl.BlockSpec((tm, C2), lambda i: (i, 0)),
        ),
        compiler_params=pltpu.CompilerParams(
            dimension_semantics=("parallel",),
            vmem_limit_bytes=int(vmem_limit),
        ),
    )


@functools.lru_cache(maxsize=None)
def _build_fused(G, r, Wq, C, rCout, ng, out_dtype_name, vmem_limit):
    tm = ng * Wq
    return pl.pallas_call(
        _ln_expand_fused_kernel,
        out_shape=jax.ShapeDtypeStruct((G, r, Wq, rCout), jnp.dtype(out_dtype_name)),
        grid_spec=pltpu.PrefetchScalarGridSpec(
            num_scalar_prefetch=0,
            grid=(pl.cdiv(G, ng), r),       # p1 innermost: the input row tile is
            in_specs=[                       # resident across the r weight slabs
                pl.BlockSpec((tm, C), lambda i, p: (i, 0)),
                pl.BlockSpec((r, C, rCout), lambda i, p: (0, 0, 0)),
                pl.BlockSpec((r, 1, rCout), lambda i, p: (0, 0, 0)),
            ],
            out_specs=pl.BlockSpec((ng, None, Wq, rCout), lambda i, p: (i, p, 0, 0)),
        ),
        compiler_params=pltpu.CompilerParams(
            dimension_semantics=("parallel", "arbitrary"),
            vmem_limit_bytes=int(vmem_limit),
        ),
    )


# ---------------------------------------------------------------------------
# Parameter preparation (hoist this out of the forward path).
# ---------------------------------------------------------------------------
class PatchExpandingParams(NamedTuple):
    mode: str            # 'fused' | 'perm_flat' | 'literal_flat'
    w: jax.Array         # fused: (r, C, r*Cout) bf16 ; flat: (C, C2) bf16
    bias: jax.Array      # fused: (r, 1, r*Cout) f32  ; flat: (1, C2) f32


def prepare_patch_expanding(gamma, beta, weight, W, *, ratio=2, factor=1,
                            fuse_rearrange=None):
    """One-time weight/bias preparation.  Call once at parameter-load time."""
    C2, C = weight.shape
    r = int(ratio)
    assert C2 == factor * r * C, (weight.shape, C, r, factor)
    assert C % r == 0, "dim must be divisible by ratio"
    Cout = C // r * factor
    assert Cout % (r * r) == 0, "channel count incompatible with the rearrange"
    cc = Cout // (r * r)
    rCout = r * Cout

    gamma = gamma.reshape(C).astype(jnp.float32)
    beta = beta.reshape(C).astype(jnp.float32)
    w32 = weight.astype(jnp.float32)

    can_fuse = (W % r == 0)
    Wq = W // r if can_fuse else 0
    if fuse_rearrange is None:
        # auto: lane-dense output stores (r*Cout >= 128) and a free in-kernel
        # reshape (Wq % 8 == 0); otherwise the coarse-transpose fallback is used.
        use_fused = can_fuse and (Wq % 8 == 0) and (rCout >= 128)
    else:
        use_fused = bool(fuse_rearrange) and can_fuse

    if can_fuse:
        # Original output channel o has mixed-radix digits (a, b2, p2, p1, cc).
        # Regroup so p1 leads and each p1 slab's channels are already in the
        # final (a, b2, p2, cc) order of the rearranged output.
        w6 = w32.reshape(r, r, r, r, cc, C)                      # (a,b2,p2,p1,cc,C)
        w_p1 = jnp.transpose(w6, (3, 5, 0, 1, 2, 4)).reshape(r, C, rCout)
        bias_p1 = jnp.einsum("pck,c->pk", w_p1, beta)            # beta @ W^T
        w_p1 = w_p1 * gamma[None, :, None]                       # fold gamma
        if use_fused:
            return PatchExpandingParams("fused", w_p1.astype(jnp.bfloat16),
                                        bias_p1.reshape(r, 1, rCout))
        w_flat = jnp.transpose(w_p1, (1, 0, 2)).reshape(C, C2)
        return PatchExpandingParams("perm_flat", w_flat.astype(jnp.bfloat16),
                                    bias_p1.reshape(1, C2))

    # odd W: keep the native channel order; the rearrange stays in XLA.
    bias = (w32 @ beta).reshape(1, C2)
    w_flat = (w32 * gamma[None, :]).T                             # (C, C2)
    return PatchExpandingParams("literal_flat", w_flat.astype(jnp.bfloat16), bias)


# ---------------------------------------------------------------------------
# Forward.
# ---------------------------------------------------------------------------
def patch_expanding_apply(x, H, W, params, *, ratio=2, factor=1,
                          out_dtype=None, row_tile=None):
    """PatchExpanding.forward with pre-prepared params.

    x: (B, H*W, C)  ->  (B, ratio*ratio*H*W, C // ratio * factor)
    """
    B, L, C = x.shape
    r = int(ratio)
    assert L == H * W, "input feature has wrong size"
    Cout = C // r * factor
    C2 = factor * r * C
    cc = Cout // (r * r)
    out_dtype = jnp.dtype(out_dtype) if out_dtype is not None else x.dtype
    x2d = x.reshape(B * L, C)
    M = B * L

    if params.mode == "fused":
        assert W % r == 0
        Wq = W // r
        rCout = r * Cout
        G = M // Wq                                   # (b, h, w_hi) groups
        quantum = (8 // math.gcd(Wq, 8)) * Wq         # multiple of Wq and of 8
        per_row = 2 * (C * x2d.dtype.itemsize + rCout * out_dtype.itemsize)
        const = 2 * (params.w.size * params.w.dtype.itemsize
                     + params.bias.size * params.bias.dtype.itemsize)
        if row_tile is not None:
            tm = min(int(row_tile), M)
            if tm < M:
                tm = max(quantum, (tm // quantum) * quantum)
        else:
            tm = _choose_rows(M, per_row, const, quantum)
        ng = max(1, tm // Wq)
        out4 = _build_fused(G, r, Wq, C, rCout, ng, out_dtype.name,
                            _vmem_limit(const, per_row, ng * Wq))(
                                x2d, params.w, params.bias)
        return out4.reshape(B, r * r * H * W, Cout)   # free view: layout is final

    per_row = 2 * (C * x2d.dtype.itemsize + C2 * out_dtype.itemsize)
    const = 2 * (params.w.size * params.w.dtype.itemsize
                 + params.bias.size * params.bias.dtype.itemsize)
    if row_tile is not None:
        tm = min(int(row_tile), M)
        if tm < M:
            tm = max(8, (tm // 8) * 8)
    else:
        tm = _choose_rows(M, per_row, const, 8)
    z2d = _build_flat(M, C, C2, tm, out_dtype.name,
                      _vmem_limit(const, per_row, tm))(x2d, params.w, params.bias)

    if params.mode == "perm_flat":
        assert W % r == 0
        # Channel permutation is already folded into the weight; only the coarse
        # spatial interleave (contiguous r*Cout chunks) is left to XLA.
        z = z2d.reshape(B, H, r, W // r, r, r, Cout)
        z = jnp.transpose(z, (0, 1, 2, 4, 3, 5, 6))
        return z.reshape(B, r * r * H * W, Cout)

    # literal fallback (W % ratio != 0)
    # TODO(synk): the odd-W spatial interleave has no rectangular BlockSpec
    # expression, so it stays as an XLA rearrange on this rare path.
    z = z2d.reshape(B, H * r, W * r, Cout)
    z = z.reshape(B, H * r, W * r, r, r, cc)
    z = jnp.transpose(z, (0, 1, 4, 2, 3, 5))
    z = z.reshape(B, H * r * r, W * r * r, cc)
    return z.reshape(B, -1, Cout)


def patch_expanding(x, H, W, gamma, beta, weight, *, ratio=2, factor=1,
                    out_dtype=None, row_tile=None, fuse_rearrange=None):
    """Convenience wrapper (prefer prepare_patch_expanding + *_apply in a loop)."""
    params = prepare_patch_expanding(gamma, beta, weight, W, ratio=ratio,
                                     factor=factor, fuse_rearrange=fuse_rearrange)
    return patch_expanding_apply(x, H, W, params, ratio=ratio, factor=factor,
                                 out_dtype=out_dtype, row_tile=row_tile)


# ---------------------------------------------------------------------------
# Literal JAX reference of the PyTorch module (testing only).
# ---------------------------------------------------------------------------
def _reference(x, H, W, gamma, beta, weight, *, ratio=2, factor=1,
               matmul_dtype=jnp.float32):
    B, L, C = x.shape
    Cout = C // ratio * factor
    cc = Cout // (ratio * ratio)
    mean = jnp.mean(x, axis=-1, keepdims=True)
    var = jnp.mean(jnp.square(x - mean), axis=-1, keepdims=True)
    y = (x - mean) / jnp.sqrt(var + EPS) * gamma + beta
    z = jnp.einsum("blc,oc->blo", y.astype(matmul_dtype),
                   weight.astype(matmul_dtype),
                   preferred_element_type=jnp.float32).astype(x.dtype)
    z = z.reshape(B, H * ratio, W * ratio, Cout)
    z = z.reshape(B, H * ratio, W * ratio, ratio, ratio, cc)
    z = jnp.transpose(z, (0, 1, 4, 2, 3, 5))
    z = z.reshape(B, H * ratio * ratio, W * ratio * ratio, cc)
    return z.reshape(B, -1, Cout)


if __name__ == "__main__":
    def _check(out, ref16, ref32, name, *, a16=5e-2, r16=5e-2, a32=1e-1, r32=5e-2):
        out = jax.block_until_ready(out)
        assert out.shape == ref32.shape, (name, out.shape, ref32.shape)
        o = out.astype(jnp.float32)
        assert jnp.allclose(o, ref16, atol=a16, rtol=r16), \
            (name, float(jnp.max(jnp.abs(o - ref16))))
        assert jnp.allclose(o, ref32, atol=a32, rtol=r32), \
            (name, float(jnp.max(jnp.abs(o - ref32))))
        return o

    key = jax.random.PRNGKey(0)
    ratio, factor = 2, 1

    # -------- even-W config (fused-rearrange capable) --------
    B, H, W, C = 2, 8, 16, 32
    Cout = C // ratio * factor
    kx, kw, key = jax.random.split(key, 3)
    x = jax.random.normal(kx, (B, H * W, C), dtype=jnp.float32)
    weight = (jax.random.normal(kw, (factor * ratio * C, C), dtype=jnp.float32)
              / jnp.sqrt(jnp.float32(C)))
    gamma = jnp.linspace(0.5, 1.5, C, dtype=jnp.float32)
    beta = jnp.linspace(-0.2, 0.2, C, dtype=jnp.float32)

    ref16 = _reference(x, H, W, gamma, beta, weight, ratio=ratio, factor=factor,
                       matmul_dtype=jnp.bfloat16)
    ref32 = _reference(x, H, W, gamma, beta, weight, ratio=ratio, factor=factor,
                       matmul_dtype=jnp.float32)

    # auto path: r*Cout = 32 < 128 -> folded-permutation flat kernel + coarse transpose
    out_flat = _check(patch_expanding(x, H, W, gamma, beta, weight,
                                      ratio=ratio, factor=factor),
                      ref16, ref32, "perm_flat")
    # forced fused-rearrange path: no post-kernel transpose at all
    out_fused = _check(patch_expanding(x, H, W, gamma, beta, weight, ratio=ratio,
                                       factor=factor, fuse_rearrange=True),
                       ref16, ref32, "fused")
    assert jnp.allclose(out_fused, out_flat, atol=1e-2, rtol=1e-2), \
        float(jnp.max(jnp.abs(out_fused - out_flat)))
    # multi-step grids with masked tails (row tile does not divide the row count)
    _check(patch_expanding(x, H, W, gamma, beta, weight, ratio=ratio,
                           factor=factor, row_tile=48),
           ref16, ref32, "perm_flat tail")
    _check(patch_expanding(x, H, W, gamma, beta, weight, ratio=ratio,
                           factor=factor, fuse_rearrange=True, row_tile=48),
           ref16, ref32, "fused tail")
    # bf16 output (recommended when the surrounding model runs bf16)
    _check(patch_expanding(x, H, W, gamma, beta, weight, ratio=ratio,
                           factor=factor, fuse_rearrange=True,
                           out_dtype=jnp.bfloat16),
           ref16, ref32, "fused bf16 out", a16=7e-2, r16=7e-2)

    # -------- odd-W config: literal rearrange fallback --------
    B2, H2, W2, Cb = 1, 4, 7, 16
    kx2, kw2, key = jax.random.split(key, 3)
    x2 = jax.random.normal(kx2, (B2, H2 * W2, Cb), dtype=jnp.float32)
    w2 = (jax.random.normal(kw2, (factor * ratio * Cb, Cb), dtype=jnp.float32)
          / jnp.sqrt(jnp.float32(Cb)))
    g2 = jnp.linspace(0.8, 1.2, Cb, dtype=jnp.float32)
    b2 = jnp.linspace(-0.1, 0.1, Cb, dtype=jnp.float32)
    ref16b = _reference(x2, H2, W2, g2, b2, w2, ratio=ratio, factor=factor,
                        matmul_dtype=jnp.bfloat16)
    ref32b = _reference(x2, H2, W2, g2, b2, w2, ratio=ratio, factor=factor,
                        matmul_dtype=jnp.float32)
    _check(patch_expanding(x2, H2, W2, g2, b2, w2, ratio=ratio, factor=factor),
           ref16b, ref32b, "literal")

    print("KERNEL_OK")
</pallas_src>

<mosaic_0001>
module attributes {stable_mosaic.version = 11 : i64} {
  func.func @_ln_expand_flat_kernel(%arg0: i32, %arg1: memref<256x32xf32, #tpu.memory_space<vmem>>, %arg2: memref<32x64xbf16, #tpu.memory_space<vmem>>, %arg3: memref<1x64xf32, #tpu.memory_space<vmem>>, %arg4: memref<256x64xf32, #tpu.memory_space<vmem>>) attributes {dimension_semantics = [#tpu.dimension_semantics<parallel>], iteration_bounds = array<i64: 1>, scalar_prefetch = 0 : i64, scratch_operands = 0 : i64, tpu.core_type = #tpu.core_type<tc>, window_params = [{transform_indices = @transform_0, window_bounds = array<i64: 256, 32>}, {pipeline_mode = #tpu.pipeline_mode<synchronous>, transform_indices = @transform_1, window_bounds = array<i64: 32, 64>}, {pipeline_mode = #tpu.pipeline_mode<synchronous>, transform_indices = @transform_2, window_bounds = array<i64: 1, 64>}, {transform_indices = @transform_3, window_bounds = array<i64: 256, 64>}]} {
    %c0 = arith.constant 0 : index
    %c0_0 = arith.constant 0 : index
    %0 = vector.load %arg1[%c0, %c0_0] : memref<256x32xf32, #tpu.memory_space<vmem>>, vector<256x32xf32>
    %cst = arith.constant dense<0.000000e+00> : vector<256xf32>
    %1 = vector.multi_reduction <add>, %0, %cst [1] : vector<256x32xf32> to vector<256xf32>
    %2 = vector.shape_cast %1 : vector<256xf32> to vector<256x1xf32>
    %cst_1 = arith.constant 3.200000e+01 : f32
    %3 = vector.broadcast %cst_1 : f32 to vector<256x1xf32>
    %4 = arith.divf %2, %3 : vector<256x1xf32>
    %5 = vector.broadcast %4 : vector<256x1xf32> to vector<256x32xf32>
    %6 = arith.subf %0, %5 : vector<256x32xf32>
    %7 = arith.mulf %6, %6 : vector<256x32xf32>
    %cst_2 = arith.constant dense<0.000000e+00> : vector<256xf32>
    %8 = vector.multi_reduction <add>, %7, %cst_2 [1] : vector<256x32xf32> to vector<256xf32>
    %9 = vector.shape_cast %8 : vector<256xf32> to vector<256x1xf32>
    %cst_3 = arith.constant 3.200000e+01 : f32
    %10 = vector.broadcast %cst_3 : f32 to vector<256x1xf32>
    %11 = arith.divf %9, %10 : vector<256x1xf32>
    %cst_4 = arith.constant 9.99999974E-6 : f32
    %12 = vector.broadcast %cst_4 : f32 to vector<256x1xf32>
    %13 = arith.addf %11, %12 : vector<256x1xf32>
    %14 = math.rsqrt %13 : vector<256x1xf32>
    %15 = vector.broadcast %14 : vector<256x1xf32> to vector<256x32xf32>
    %16 = arith.mulf %6, %15 : vector<256x32xf32>
    %17 = arith.truncf %16 : vector<256x32xf32> to vector<256x32xbf16>
    %c0_5 = arith.constant 0 : index
    %c0_6 = arith.constant 0 : index
    %18 = vector.load %arg2[%c0_5, %c0_6] : memref<32x64xbf16, #tpu.memory_space<vmem>>, vector<32x64xbf16>
    %cst_7 = arith.constant dense<0.000000e+00> : vector<256x64xf32>
    %19 = tpu.matmul %17, %18, %cst_7 {dimension_numbers = #tpu.dot_dimension_numbers<[1], [0], [0], [1], [0, 0, 1, 1], [], []>} : vector<256x32xbf16>, vector<32x64xbf16>, vector<256x64xf32> -> vector<256x64xf32>
    %c0_8 = arith.constant 0 : index
    %c0_9 = arith.constant 0 : index
    %20 = vector.load %arg3[%c0_8, %c0_9] : memref<1x64xf32, #tpu.memory_space<vmem>>, vector<1x64xf32>
    %21 = vector.broadcast %20 : vector<1x64xf32> to vector<256x64xf32>
    %22 = arith.addf %19, %21 : vector<256x64xf32>
    %c0_10 = arith.constant 0 : index
    %c0_11 = arith.constant 0 : index
    %23 = vector.load %arg4[%c0_10, %c0_11] : memref<256x64xf32, #tpu.memory_space<vmem>>, vector<256x64xf32>
    tpu.vector_store %arg4[%c0_10, %c0_11], %22 {strides = array<i32>} : memref<256x64xf32, #tpu.memory_space<vmem>>, vector<256x64xf32>,
    return
  }
  func.func @transform_0(%arg0: i32) -> (i32, i32) {
    %c0_i32 = arith.constant 0 : i32
    %c0_i32_0 = arith.constant 0 : i32
    return %arg0, %c0_i32 : i32, i32
  }
  func.func @transform_1(%arg0: i32) -> (i32, i32) {
    %c0_i32 = arith.constant 0 : i32
    %c0_i32_0 = arith.constant 0 : i32
    %c0_i32_1 = arith.constant 0 : i32
    return %c0_i32, %c0_i32_0 : i32, i32
  }
  func.func @transform_2(%arg0: i32) -> (i32, i32) {
    %c0_i32 = arith.constant 0 : i32
    %c0_i32_0 = arith.constant 0 : i32
    %c0_i32_1 = arith.constant 0 : i32
    return %c0_i32, %c0_i32_0 : i32, i32
  }
  func.func @transform_3(%arg0: i32) -> (i32, i32) {
    %c0_i32 = arith.constant 0 : i32
    %c0_i32_0 = arith.constant 0 : i32
    return %arg0, %c0_i32 : i32, i32
  }
}

</mosaic_0001>

<bundles_post_ra>
// kernel: tpu_custom_call.1
= control target key start
LH: loop header
LB: loop body
LE: loop exit
PB: predicated region body
PF: predicated region fallthrough
CT: control target
= control target key end

     0   :  { %vm47_vm0 = vcmask 261120   ;;  %s2394_s0 = inlined_call_operand.vmem [shape: f32[256,32], index: 0, kind: input, shape index: {}]   ;;  %s2395_s2 = inlined_call_operand.vmem [shape: f32[1,64], index: 2, kind: input, shape index: {}]   ;;  %s2396_s1 = inlined_call_operand.vmem [shape: bf16[32,64], index: 1, kind: input, shape index: {}]   ;;  %s2397_s3 = inlined_call_operand.vmem [shape: f32[256,64], index: 3, kind: output, shape index: {}]  }
   0x1   :  { %v1093_v0 = vld [vmem:[%s2394_s0 + $0xc0] sm:$0xff]  ;;  %v1114_v6 = vld [vmem:[%s2394_s0 + $0xc8] sm:$0xff]  ;;  %v1145_v14 = vld [vmem:[%s2394_s0 + $0x90] sm:$0xff] }
   0x2   :  { %v1098_v1 = vld [vmem:[%s2394_s0 + $0x80] sm:$0xff]  ;;  %v120_v3 = vsel %vm47_vm0, %v1093_v0, 0.0  ;;  %v1119_v7 = vld [vmem:[%s2394_s0 + $0x88] sm:$0xff]  ;;  %v123_v9 = vsel %vm47_vm0, %v1114_v6, 0.0  ;;  %v102_v17 = vsel %vm47_vm0, %v1145_v14, 0.0  ;;  %v1156_v18 = vld [vmem:[%s2394_s0 + $0xd0] sm:$0xff] }
   0x3   :  { %v1103_v2 = vld [vmem:[%s2394_s0] sm:$0xff]  ;;  %v96_v4 = vsel %vm47_vm0, %v1098_v1, 0.0  ;;  %121 = vadd.xlane.f32.xlu1 %v120_v3  ;;  %v1124_v8 = vld [vmem:[%s2394_s0 + $0x8] sm:$0xff]  ;;  %v99_v10 = vsel %vm47_vm0, %v1119_v7, 0.0  ;;  %v1161_v19 = vld [vmem:[%s2394_s0 + $0x98] sm:$0xff]  ;;  %v126_v21 = vsel %vm47_vm0, %v1156_v18, 0.0 }
   0x4   :  { %v48_v5 = vsel %vm47_vm0, %v1103_v2, 0.0  ;;  %97 = vadd.xlane.f32.xlu0 %v96_v4  ;;  %v51_v11 = vsel %vm47_vm0, %v1124_v8, 0.0  ;;  %v1135_v12 = vld [vmem:[%s2394_s0 + $0x48] sm:$0xff]  ;;  %v1140_v13 = vld [vmem:[%s2394_s0 + $0x40] sm:$0xff]  ;;  %v1166_v20 = vld [vmem:[%s2394_s0 + $0xd8] sm:$0xff]  ;;  %v105_v22 = vsel %vm47_vm0, %v1161_v19, 0.0 }
   0x5   :  { %49 = vadd.xlane.f32.xlu2 %v48_v5  ;;  %v75_v15 = vsel %vm47_vm0, %v1135_v12, 0.0  ;;  %v72_v16 = vsel %vm47_vm0, %v1140_v13, 0.0  ;;  %v129_v23 = vsel %vm47_vm0, %v1166_v20, 0.0  ;;  %v1177_v24 = vld [vmem:[%s2394_s0 + $0x18] sm:$0xff]  ;;  %v1182_v25 = vld [vmem:[%s2394_s0 + $0x10] sm:$0xff]  ;;  %v1198_v30 = vld [vmem:[%s2394_s0 + $0xa0] sm:$0xff] }
   0x6   :  { %v1187_v26 = vld [vmem:[%s2394_s0 + $0x50] sm:$0xff]  ;;  %v57_v27 = vsel %vm47_vm0, %v1177_v24, 0.0  ;;  %v54_v28 = vsel %vm47_vm0, %v1182_v25, 0.0  ;;  %v1203_v31 = vld [vmem:[%s2394_s0 + $0x58] sm:$0xff]  ;;  %v1208_v32 = vld [vmem:[%s2394_s0 + $0xa8] sm:$0xff]  ;;  %v108_v33 = vsel %vm47_vm0, %v1198_v30, 0.0 }
   0x7   :  { %v78_v29 = vsel %vm47_vm0, %v1187_v26, 0.0  ;;  %v81_v34 = vsel %vm47_vm0, %v1203_v31, 0.0  ;;  %v111_v35 = vsel %vm47_vm0, %v1208_v32, 0.0  ;;  %v1219_v36 = vld [vmem:[%s2394_s0 + $0xe8] sm:$0xff]  ;;  %v1224_v37 = vld [vmem:[%s2394_s0 + $0xe0] sm:$0xff]  ;;  %v1261_v48 = vld [vmem:[%s2394_s0 + $0xb0] sm:$0xff] }
   0x8   :  { %v1229_v38 = vld [vmem:[%s2394_s0 + $0x20] sm:$0xff]  ;;  %v135_v39 = vsel %vm47_vm0, %v1219_v36, 0.0  ;;  %v132_v40 = vsel %vm47_vm0, %v1224_v37, 0.0  ;;  %v1245_v43 = vld [vmem:[%s2394_s0 + $0x28] sm:$0xff]  ;;  %v1266_v49 = vld [vmem:[%s2394_s0 + $0xf0] sm:$0xff]  ;;  %v114_v51 = vsel %vm47_vm0, %v1261_v48, 0.0 }
   0x9   :  { %v60_v41 = vsel %vm47_vm0, %v1229_v38, 0.0  ;;  %v1240_v42 = vld [vmem:[%s2394_s0 + $0x60] sm:$0xff]  ;;  %v1250_v44 = vld [vmem:[%s2394_s0 + $0x68] sm:$0xff]  ;;  %v63_v46 = vsel %vm47_vm0, %v1245_v43, 0.0  ;;  %v1271_v50 = vld [vmem:[%s2394_s0 + $0xb8] sm:$0xff]  ;;  %v138_v52 = vsel %vm47_vm0, %v1266_v49, 0.0 }
   0xa   :  { %v84_v45 = vsel %vm47_vm0, %v1240_v42, 0.0  ;;  %v87_v47 = vsel %vm47_vm0, %v1250_v44, 0.0  ;;  %v117_v53 = vsel %vm47_vm0, %v1271_v50, 0.0  ;;  %v1282_v54 = vld [vmem:[%s2394_s0 + $0xf8] sm:$0xff]  ;;  %v1287_v55 = vld [vmem:[%s2394_s0 + $0x30] sm:$0xff]  ;;  %v1069_v3 = vmov 32.0  }
   0xb   :  { %124 = vadd.xlane.f32.xlu1 %v123_v9  ;;  %v1292_v56 = vld [vmem:[%s2394_s0 + $0x70] sm:$0xff]  ;;  %v141_v57 = vsel %vm47_vm0, %v1282_v54, 0.0  ;;  %v66_v58 = vsel %vm47_vm0, %v1287_v55, 0.0  ;;  %v1303_v60 = vld [vmem:[%s2394_s0 + $0x38] sm:$0xff]  ;;  %1003 = vrcp.f32 %v1069_v3 }
   0xc   :  { %100 = vadd.xlane.f32.xlu0 %v99_v10  ;;  %v90_v59 = vsel %vm47_vm0, %v1292_v56, 0.0  ;;  %v1308_v61 = vld [vmem:[%s2394_s0 + $0x78] sm:$0xff]  ;;  %v69_v62 = vsel %vm47_vm0, %v1303_v60, 0.0 }
   0xd   :  { %52 = vadd.xlane.f32.xlu2 %v51_v11  ;;  %v93_v63 = vsel %vm47_vm0, %v1308_v61, 0.0 }
  0x11   :  { %v1004_v4 = vpop.eup %1003 }
  0x12   :  { %v145_v5 = vmul.f32 32.0, %v1004_v4  ;;  %vm149_vm1 = vweird.f32 %v1004_v4 }
  0x13   :  { %76 = vadd.xlane.f32.xlu1 %v75_v15 }
  0x14   :  { %73 = vadd.xlane.f32.xlu0 %v72_v16  ;;  %v146_v9 = vsub.f32 1.0, %v145_v5 }
  0x15   :  { %103 = vadd.xlane.f32.xlu2 %v102_v17 }
  0x16   :  { %v147_v10 = vmul.f32 %v1004_v4, %v146_v9 }
  0x18   :  { %v148_v11 = vadd.f32 %v1004_v4, %v147_v10 }
  0x1a   :  { %v1314_v15 = vsel %vm149_vm1, %v1004_v4, %v148_v11 }
  0x1b   :  { %127 = vadd.xlane.f32.xlu1 %v126_v21 }
  0x1c   :  { %106 = vadd.xlane.f32.xlu0 %v105_v22 }
  0x1d   :  { %130 = vadd.xlane.f32.xlu2 %v129_v23 }
  0x23   :  { %58 = vadd.xlane.f32.xlu1 %v57_v27 }
  0x24   :  { %55 = vadd.xlane.f32.xlu0 %v54_v28 }
  0x25   :  { %79 = vadd.xlane.f32.xlu2 %v78_v29 }
  0x2b   :  { %109 = vadd.xlane.f32.xlu1 %v108_v33 }
  0x2c   :  { %82 = vadd.xlane.f32.xlu0 %v81_v34 }
  0x2d   :  { %112 = vadd.xlane.f32.xlu2 %v111_v35 }
  0x33   :  { %136 = vadd.xlane.f32.xlu1 %v135_v39 }
  0x34   :  { %133 = vadd.xlane.f32.xlu0 %v132_v40 }
  0x35   :  { %61 = vadd.xlane.f32.xlu2 %v60_v41 }
  0x3b   :  { %85 = vadd.xlane.f32.xlu1 %v84_v45 }
  0x3c   :  { %64 = vadd.xlane.f32.xlu0 %v63_v46 }
  0x3d   :  { %88 = vadd.xlane.f32.xlu2 %v87_v47 }
  0x43   :  { %115 = vadd.xlane.f32.xlu1 %v114_v51 }
  0x44   :  { %139 = vadd.xlane.f32.xlu0 %v138_v52 }
  0x45   :  { %118 = vadd.xlane.f32.xlu2 %v117_v53 }
  0x4b   :  { %142 = vadd.xlane.f32.xlu1 %v141_v57 }
  0x4c   :  { %67 = vadd.xlane.f32.xlu0 %v66_v58 }
  0x4d   :  { %91 = vadd.xlane.f32.xlu2 %v90_v59 }
  0x53   :  { %70 = vadd.xlane.f32.xlu1 %v69_v62 }
  0x54   :  { %94 = vadd.xlane.f32.xlu0 %v93_v63 }
  0x76   :  { %v122_v16 = vpop.xlane.xlu1 %121 }
  0x77   :  { %v98_v17 = vpop.xlane.xlu0 %97  ;;  %v175_v21 = vmul.f32 %v1314_v15, %v122_v16 }
  0x78   :  { %v167_v22 = vmul.f32 %v1314_v15, %v98_v17  ;;  %v50_v23 = vpop.xlane.xlu2 %49 }
  0x79   :  { %v1319_v27 = vsub.f32 %v1093_v0, %v175_v21  ;;  %v151_v29 = vmul.f32 %v1314_v15, %v50_v23 }
  0x7a   :  { %v1322_v28 = vsub.f32 %v1098_v1, %v167_v22 }
  0x7b   :  { %v239_v34 = vmul.f32 %v1319_v27, %v1319_v27  ;;  %v1332_v40 = vsub.f32 %v1103_v2, %v151_v29 }
  0x7c   :  { %v231_v33 = vmul.f32 %v1322_v28, %v1322_v28 }
  0x7d   :  { %v319_v39 = vsel %vm47_vm0, %v239_v34, 0.0  ;;  %v215_v2 = vmul.f32 %v1332_v40, %v1332_v40 }
  0x7e   :  { %v295_v35 = vsel %vm47_vm0, %v231_v33, 0.0  ;;  %v125_v0 = vpop.xlane.xlu1 %124  ;;  %320 = vadd.xlane.f32.xlu2 %v319_v39 }
  0x7f   :  { %v101_v41 = vpop.xlane.xlu0 %100  ;;  %296 = vadd.xlane.f32.xlu0 %v295_v35  ;;  %v176_v1 = vmul.f32 %v1314_v15, %v125_v0  ;;  %v247_v63 = vsel %vm47_vm0, %v215_v2, 0.0 }
  0x80   :  { %v168_v45 = vmul.f32 %v1314_v15, %v101_v41  ;;  %v53_v46 = vpop.xlane.xlu2 %52 }
  0x81   :  { %v1337_v47 = vsub.f32 %v1114_v6, %v176_v1  ;;  %v152_v52 = vmul.f32 %v1314_v15, %v53_v46 }
  0x82   :  { %v1340_v51 = vsub.f32 %v1119_v7, %v168_v45 }
  0x83   :  { %v240_v57 = vmul.f32 %v1337_v47, %v1337_v47  ;;  %v1350_v58 = vsub.f32 %v1124_v8, %v152_v52 }
  0x84   :  { %v232_v53 = vmul.f32 %v1340_v51, %v1340_v51 }
  0x85   :  { %v322_v59 = vsel %vm47_vm0, %v240_v57, 0.0  ;;  %v216_v11 = vmul.f32 %v1350_v58, %v1350_v58 }
  0x86   :  { %v298_v6 = vsel %vm47_vm0, %v232_v53, 0.0  ;;  %v77_v7 = vpop.xlane.xlu1 %76  ;;  %248 = vadd.xlane.f32.xlu2 %v247_v63 }
  0x87   :  { %v74_v62 = vpop.xlane.xlu0 %73  ;;  %299 = vadd.xlane.f32.xlu1 %v298_v6  ;;  %323 = vadd.xlane.f32.xlu0 %v322_v59  ;;  %v160_v3 = vmul.f32 %v1314_v15, %v77_v7 }
  0x88   :  { %v159_v4 = vmul.f32 %v1314_v15, %v74_v62  ;;  %v104_v5 = vpop.xlane.xlu2 %103 }
  0x89   :  { %v1358_v9 = vsub.f32 %v1135_v12, %v160_v3  ;;  %v169_v10 = vmul.f32 %v1314_v15, %v104_v5 }
  0x8a   :  { %v1361_v8 = vsub.f32 %v1140_v13, %v159_v4  ;;  %v250_v13 = vsel %vm47_vm0, %v216_v11, 0.0 }
  0x8b   :  { %v224_v17 = vmul.f32 %v1358_v9, %v1358_v9  ;;  %v1371_v21 = vsub.f32 %v1145_v14, %v169_v10 }
  0x8c   :  { %v223_v16 = vmul.f32 %v1361_v8, %v1361_v8 }
  0x8d   :  { %v274_v22 = vsel %vm47_vm0, %v224_v17, 0.0  ;;  %v233_v41 = vmul.f32 %v1371_v21, %v1371_v21 }
  0x8e   :  { %v271_v12 = vsel %vm47_vm0, %v223_v16, 0.0  ;;  %v128_v23 = vpop.xlane.xlu1 %127  ;;  %275 = vadd.xlane.f32.xlu2 %v274_v22 }
  0x8f   :  { %v107_v29 = vpop.xlane.xlu0 %106  ;;  %272 = vadd.xlane.f32.xlu1 %v271_v12  ;;  %251 = vadd.xlane.f32.xlu0 %v250_v13  ;;  %v177_v33 = vmul.f32 %v1314_v15, %v128_v23 }
  0x90   :  { %v170_v34 = vmul.f32 %v1314_v15, %v107_v29  ;;  %v131_v35 = vpop.xlane.xlu2 %130 }
  0x91   :  { %v1379_v39 = vsub.f32 %v1156_v18, %v177_v33  ;;  %v178_v0 = vmul.f32 %v1314_v15, %v131_v35 }
  0x92   :  { %v1382_v14 = vsub.f32 %v1161_v19, %v170_v34  ;;  %v301_v19 = vsel %vm47_vm0, %v233_v41, 0.0 }
  0x93   :  { %v241_v45 = vmul.f32 %v1379_v39, %v1379_v39  ;;  %v1392_v46 = vsub.f32 %v1166_v20, %v178_v0 }
  0x94   :  { %v234_v1 = vmul.f32 %v1382_v14, %v1382_v14 }
  0x95   :  { %v325_v52 = vsel %vm47_vm0, %v241_v45, 0.0  ;;  %v242_v63 = vmul.f32 %v1392_v46, %v1392_v46 }
  0x96   :  { %v304_v18 = vsel %vm47_vm0, %v234_v1, 0.0  ;;  %v59_v2 = vpop.xlane.xlu1 %58 }
  0x97   :  { %v56_v53 = vpop.xlane.xlu0 %55  ;;  %326 = vadd.xlane.f32.xlu0 %v325_v52  ;;  %302 = vadd.xlane.f32.xlu1 %v301_v19  ;;  %v154_v57 = vmul.f32 %v1314_v15, %v59_v2 }
  0x98   :  { %v153_v6 = vmul.f32 %v1314_v15, %v56_v53  ;;  %305 = vadd.xlane.f32.xlu2 %v304_v18  ;;  %v80_v59 = vpop.xlane.xlu2 %79 }
  0x99   :  { %v1400_v7 = vsub.f32 %v1177_v24, %v154_v57  ;;  %v161_v62 = vmul.f32 %v1314_v15, %v80_v59 }
  0x9a   :  { %v1403_v20 = vsub.f32 %v1182_v25, %v153_v6  ;;  %v328_v25 = vsel %vm47_vm0, %v242_v63, 0.0 }
  0x9b   :  { %v218_v4 = vmul.f32 %v1400_v7, %v1400_v7  ;;  %v1413_v5 = vsub.f32 %v1187_v26, %v161_v62 }
  0x9c   :  { %v217_v3 = vmul.f32 %v1403_v20, %v1403_v20 }
  0x9d   :  { %v256_v10 = vsel %vm47_vm0, %v218_v4, 0.0  ;;  %v225_v29 = vmul.f32 %v1413_v5, %v1413_v5 }
  0x9e   :  { %v253_v24 = vsel %vm47_vm0, %v217_v3, 0.0  ;;  %v110_v11 = vpop.xlane.xlu1 %109 }
  0x9f   :  { %v83_v16 = vpop.xlane.xlu0 %82  ;;  %257 = vadd.xlane.f32.xlu0 %v256_v10  ;;  %329 = vadd.xlane.f32.xlu1 %v328_v25  ;;  %v171_v17 = vmul.f32 %v1314_v15, %v110_v11 }
  0xa0   :  { %v162_v12 = vmul.f32 %v1314_v15, %v83_v16  ;;  %254 = vadd.xlane.f32.xlu2 %v253_v24  ;;  %v113_v22 = vpop.xlane.xlu2 %112 }
  0xa1   :  { %v1421_v13 = vsub.f32 %v1198_v30, %v171_v17  ;;  %v172_v23 = vmul.f32 %v1314_v15, %v113_v22 }
  0xa2   :  { %v1424_v26 = vsub.f32 %v1203_v31, %v162_v12  ;;  %v277_v31 = vsel %vm47_vm0, %v225_v29, 0.0 }
  0xa3   :  { %v235_v34 = vmul.f32 %v1421_v13, %v1421_v13  ;;  %v1434_v35 = vsub.f32 %v1208_v32, %v172_v23 }
  0xa4   :  { %v226_v33 = vmul.f32 %v1424_v26, %v1424_v26 }
  0xa5   :  { %v307_v0 = vsel %vm47_vm0, %v235_v34, 0.0  ;;  %v236_v53 = vmul.f32 %v1434_v35, %v1434_v35 }
  0xa6   :  { %v280_v30 = vsel %vm47_vm0, %v226_v33, 0.0  ;;  %v137_v41 = vpop.xlane.xlu1 %136 }
  0xa7   :  { %v134_v1 = vpop.xlane.xlu0 %133  ;;  %308 = vadd.xlane.f32.xlu0 %v307_v0  ;;  %278 = vadd.xlane.f32.xlu1 %v277_v31  ;;  %v180_v45 = vmul.f32 %v1314_v15, %v137_v41 }
  0xa8   :  { %v179_v18 = vmul.f32 %v1314_v15, %v134_v1  ;;  %281 = vadd.xlane.f32.xlu2 %v280_v30  ;;  %v62_v52 = vpop.xlane.xlu2 %61 }
  0xa9   :  { %v1442_v19 = vsub.f32 %v1219_v36, %v180_v45  ;;  %v155_v2 = vmul.f32 %v1314_v15, %v62_v52 }
  0xaa   :  { %v1445_v32 = vsub.f32 %v1224_v37, %v179_v18  ;;  %v310_v37 = vsel %vm47_vm0, %v236_v53, 0.0 }
  0xab   :  { %v244_v6 = vmul.f32 %v1442_v19, %v1442_v19  ;;  %v1455_v59 = vsub.f32 %v1229_v38, %v155_v2 }
  0xac   :  { %v243_v57 = vmul.f32 %v1445_v32, %v1445_v32 }
  0xad   :  { %v334_v62 = vsel %vm47_vm0, %v244_v6, 0.0  ;;  %v219_v16 = vmul.f32 %v1455_v59, %v1455_v59 }
  0xae   :  { %v331_v36 = vsel %vm47_vm0, %v243_v57, 0.0  ;;  %v86_v63 = vpop.xlane.xlu1 %85 }
  0xaf   :  { %v65_v3 = vpop.xlane.xlu0 %64  ;;  %335 = vadd.xlane.f32.xlu0 %v334_v62  ;;  %311 = vadd.xlane.f32.xlu1 %v310_v37  ;;  %v163_v4 = vmul.f32 %v1314_v15, %v86_v63 }
  0xb0   :  { %v156_v24 = vmul.f32 %v1314_v15, %v65_v3  ;;  %332 = vadd.xlane.f32.xlu2 %v331_v36  ;;  %v89_v10 = vpop.xlane.xlu2 %88 }
  0xb1   :  { %v1463_v25 = vsub.f32 %v1240_v42, %v163_v4  ;;  %v164_v11 = vmul.f32 %v1314_v15, %v89_v10 }
  0xb2   :  { %v1466_v38 = vsub.f32 %v1245_v43, %v156_v24  ;;  %v259_v43 = vsel %vm47_vm0, %v219_v16, 0.0 }
  0xb3   :  { %v227_v12 = vmul.f32 %v1463_v25, %v1463_v25  ;;  %v1476_v22 = vsub.f32 %v1250_v44, %v164_v11 }
  0xb4   :  { %v220_v17 = vmul.f32 %v1466_v38, %v1466_v38 }
  0xb5   :  { %v283_v23 = vsel %vm47_vm0, %v227_v12, 0.0  ;;  %v228_v41 = vmul.f32 %v1476_v22, %v1476_v22 }
  0xb6   :  { %v262_v42 = vsel %vm47_vm0, %v220_v17, 0.0  ;;  %v116_v29 = vpop.xlane.xlu1 %115 }
  0xb7   :  { %v140_v33 = vpop.xlane.xlu0 %139  ;;  %284 = vadd.xlane.f32.xlu0 %v283_v23  ;;  %260 = vadd.xlane.f32.xlu1 %v259_v43  ;;  %v173_v34 = vmul.f32 %v1314_v15, %v116_v29  ;;  %v286_v2 = vsel %vm47_vm0, %v228_v41, 0.0 }
  0xb8   :  { %263 = vadd.xlane.f32.xlu2 %v262_v42  ;;  %v119_v30 = vpop.xlane.xlu2 %118  ;;  %v181_v44 = vmul.f32 %v1314_v15, %v140_v33 }
  0xb9   :  { %v174_v0 = vmul.f32 %v1314_v15, %v119_v30  ;;  %v1484_v31 = vsub.f32 %v1261_v48, %v173_v34 }
  0xba   :  { %v1497_v52 = vsub.f32 %v1266_v49, %v181_v44 }
  0xbb   :  { %v1490_v1 = vsub.f32 %v1271_v50, %v174_v0  ;;  %v237_v45 = vmul.f32 %v1484_v31, %v1484_v31 }
  0xbc   :  { %2404 = vst [vmem:[#allocation2_spill] sm:$0xff] %v1497_v52  ;;  %v245_v3 = vmul.f32 %v1497_v52, %v1497_v52 }
  0xbd   :  { %v238_v18 = vmul.f32 %v1490_v1, %v1490_v1  ;;  %v313_v48 = vsel %vm47_vm0, %v237_v45, 0.0 }
  0xbe   :  { %v143_v53 = vpop.xlane.xlu1 %142 }
  0xbf   :  { %v68_v57 = vpop.xlane.xlu0 %67  ;;  %287 = vadd.xlane.f32.xlu1 %v286_v2  ;;  %v316_v6 = vsel %vm47_vm0, %v238_v18, 0.0  ;;  %v182_v50 = vmul.f32 %v1314_v15, %v143_v53  ;;  %v993_v18 = vld [vmem:[%s2396_s1] sm:$0xff] }
  0xc0   :  { %v157_v36 = vmul.f32 %v1314_v15, %v68_v57  ;;  %314 = vadd.xlane.f32.xlu2 %v313_v48  ;;  %317 = vadd.xlane.f32.xlu0 %v316_v6  ;;  %v92_v62 = vpop.xlane.xlu2 %91 }
  0xc1   :  { %v165_v37 = vmul.f32 %v1314_v15, %v92_v62  ;;  %v1506_v49 = vsub.f32 %v1282_v54, %v182_v50  ;;  %v337_v54 = vsel %vm47_vm0, %v245_v3, 0.0 }
  0xc2   :  { %v1509_v63 = vsub.f32 %v1287_v55, %v157_v36 }
  0xc3   :  { %2405 = vst [vmem:[#allocation3_spill] sm:$0xff] %v1506_v49  ;;  %v246_v4 = vmul.f32 %v1506_v49, %v1506_v49  ;;  %v1518_v10 = vsub.f32 %v1292_v56, %v165_v37 }
  0xc4   :  { %2406 = vst [vmem:[#allocation4_spill] sm:$0xff] %v1509_v63  ;;  %v221_v24 = vmul.f32 %v1509_v63, %v1509_v63 }
  0xc5   :  { %2407 = vst [vmem:[#allocation5_spill] sm:$0xff] %v1518_v10  ;;  %v340_v11 = vsel %vm47_vm0, %v246_v4, 0.0  ;;  %v229_v23 = vmul.f32 %v1518_v10, %v1518_v10 }
  0xc6   :  { %v265_v16 = vsel %vm47_vm0, %v221_v24, 0.0  ;;  %v71_v55 = vpop.xlane.xlu1 %70 }
  0xc7   :  { %v95_v17 = vpop.xlane.xlu0 %94  ;;  %338 = vadd.xlane.f32.xlu1 %v337_v54  ;;  %v158_v12 = vmul.f32 %v1314_v15, %v71_v55  ;;  %v289_v34 = vsel %vm47_vm0, %v229_v23, 0.0 }
  0xc8   :  { %v166_v42 = vmul.f32 %v1314_v15, %v95_v17  ;;  %341 = vadd.xlane.f32.xlu2 %v340_v11  ;;  %266 = vadd.xlane.f32.xlu0 %v265_v16 }
  0xc9   :  { %v1528_v56 = vsub.f32 %v1303_v60, %v158_v12  ;;  %v994_v60 = vld [vmem:[%s2396_s1 + $0x8] sm:$0xff] }
  0xca   :  { %v1531_v43 = vsub.f32 %v1308_v61, %v166_v42  ;;  %996 = vmatpush.bf16.msra.mxu2 %v994_v60  ;;  %997 = vmatpush.bf16.msra.mxu3 %v994_v60 }
  0xcb   :  { %2408 = vst [vmem:[#allocation6_spill] sm:$0xff] %v1528_v56  ;;  %v222_v29 = vmul.f32 %v1528_v56, %v1528_v56  ;;  %849 = vmatpush.bf16.msra.mxu0 %v994_v60  ;;  %995 = vmatpush.bf16.msra.mxu1 %v994_v60 }
  0xcc   :  { %2409 = vst [vmem:[#allocation7_spill] sm:$0xff] %v1531_v43  ;;  %v230_v33 = vmul.f32 %v1531_v43, %v1531_v43 }
  0xcd   :  { %v268_v30 = vsel %vm47_vm0, %v222_v29, 0.0 }
  0xce   :  { %v292_v0 = vsel %vm47_vm0, %v230_v33, 0.0  ;;  %999 = vmatpush.bf16.msra.mxu2 %v993_v18  ;;  %1000 = vmatpush.bf16.msra.mxu3 %v993_v18 }
  0xcf   :  { %269 = vadd.xlane.f32.xlu1 %v268_v30  ;;  %850 = vmatpush.bf16.msra.mxu0 %v993_v18 }
  0xd0   :  { %293 = vadd.xlane.f32.xlu0 %v292_v0  ;;  %290 = vadd.xlane.f32.xlu2 %v289_v34 }
  0xd1   :  { %998 = vmatpush.bf16.msra.mxu1 %v993_v18 }
  0xf1   :  { %v321_v44 = vpop.xlane.xlu2 %320 }
  0xf2   :  { %v297_v61 = vpop.xlane.xlu0 %296  ;;  %v367_v45 = vmul.f32 %v321_v44, %v1314_v15 }
  0xf3   :  { %v359_v41 = vmul.f32 %v297_v61, %v1314_v15 }
  0xf4   :  { %v1550_v2 = vadd.f32 1e-05, %v367_v45 }
  0xf5   :  { %v1548_v48 = vadd.f32 1e-05, %v359_v41 }
  0xf6   :  { %vm653_vm10 = vweird.f32 %v1550_v2 }
  0xf7   :  { %1005 = vrsqrt.f32 %v1548_v48  ;;  %vm573_vm9 = vweird.f32 %v1548_v48 }
  0xf8   :  { %1007 = vrsqrt.f32 %v1550_v2 }
  0xf9   :  { %v249_v36 = vpop.xlane.xlu2 %248 }
  0xfa   :  { %v300_v53 = vpop.xlane.xlu1 %299  ;;  %v324_v57 = vpop.xlane.xlu0 %323  ;;  %v343_v3 = vmul.f32 %v249_v36, %v1314_v15 }
  0xfb   :  { %v360_v6 = vmul.f32 %v300_v53, %v1314_v15  ;;  %v368_v50 = vmul.f32 %v324_v57, %v1314_v15 }
  0xfc   :  { %v1569_v54 = vadd.f32 1e-05, %v343_v3 }
  0xfd   :  { %v1556_v62 = vadd.f32 1e-05, %v360_v6  ;;  %v1558_v37 = vadd.f32 1e-05, %v368_v50  ;;  %v1561_v4 = vpop.eup %1005 }
  0xfe   :  { %v1563_v24 = vpop.eup %1007  ;;  %v568_v11 = vmul.f32 %v1561_v4, %v1548_v48  ;;  %vm574_vm2 = vweird.f32 %v1561_v4  ;;  %vm413_vm14 = vweird.f32 %v1569_v54 }
  0xff   :  { %1009 = vrsqrt.f32 %v1556_v62  ;;  %v648_v16 = vmul.f32 %v1563_v24, %v1550_v2  ;;  %vm654_vm3 = vweird.f32 %v1563_v24  ;;  %vm583_vm4 = vweird.f32 %v1556_v62  ;;  %vm1655_vm12 = vmor %vm573_vm9, %vm574_vm2 }
 0x100   :  { %1011 = vrsqrt.f32 %v1558_v37  ;;  %v569_v34 = vmul.f32 %v1561_v4, %v568_v11  ;;  %vm663_vm6 = vweird.f32 %v1558_v37  ;;  %vm1669_vm13 = vmor %vm653_vm10, %vm654_vm3 }
 0x101   :  { %v276_v23 = vpop.xlane.xlu2 %275  ;;  %1013 = vrsqrt.f32 %v1569_v54  ;;  %v649_v61 = vmul.f32 %v1563_v24, %v648_v16 }
 0x102   :  { %v273_v55 = vpop.xlane.xlu1 %272  ;;  %v252_v17 = vpop.xlane.xlu0 %251  ;;  %v352_v29 = vmul.f32 %v276_v23, %v1314_v15  ;;  %v570_v53 = vmul.f32 0.5, %v569_v34 }
 0x103   :  { %v351_v12 = vmul.f32 %v273_v55, %v1314_v15  ;;  %v344_v42 = vmul.f32 %v252_v17, %v1314_v15  ;;  %v650_v6 = vmul.f32 0.5, %v649_v61 }
 0x104   :  { %v1589_v41 = vadd.f32 1e-05, %v352_v29  ;;  %v571_v29 = vsub.f32 1.5, %v570_v53 }
 0x105   :  { %v1576_v33 = vpop.eup %1009  ;;  %v1580_v30 = vadd.f32 1e-05, %v351_v12  ;;  %v1582_v0 = vadd.f32 1e-05, %v344_v42 }
 0x106   :  { %v1584_v60 = vpop.eup %1011  ;;  %v578_v44 = vmul.f32 %v1576_v33, %v1556_v62  ;;  %vm584_vm5 = vweird.f32 %v1576_v33  ;;  %v572_v62 = vmul.f32 %v1561_v4, %v571_v29 }
 0x107   :  { %v658_v45 = vmul.f32 %v1584_v60, %v1558_v37  ;;  %1015 = vrsqrt.f32 %v1580_v30  ;;  %v1598_v11 = vpop.eup %1013  ;;  %vm664_vm7 = vweird.f32 %v1584_v60  ;;  %vm1634_vm8 = vmor %vm583_vm4, %vm584_vm5  ;;  %vm493_vm1 = vweird.f32 %v1580_v30 }
 0x108   :  { %v579_v18 = vmul.f32 %v1576_v33, %v578_v44  ;;  %1017 = vrsqrt.f32 %v1582_v0  ;;  %vm1647_vm11 = vmor %vm663_vm6, %vm664_vm7  ;;  %vm414_vm15 = vweird.f32 %v1598_v11  ;;  %vm423_vm2 = vweird.f32 %v1582_v0 }
 0x109   :  { %v659_v57 = vmul.f32 %v1584_v60, %v658_v45  ;;  %1019 = vrsqrt.f32 %v1589_v41  ;;  %v651_v45 = vsub.f32 1.5, %v650_v6  ;;  %vm503_vm5 = vweird.f32 %v1589_v41  ;;  %vm1740_vm6 = vmor %vm413_vm14, %vm414_vm15 }
 0x10a   :  { %v580_v50 = vmul.f32 0.5, %v579_v18  ;;  %v327_v36 = vpop.xlane.xlu0 %326  ;;  %v303_v3 = vpop.xlane.xlu1 %302  ;;  %v408_v18 = vmul.f32 %v1598_v11, %v1569_v54 }
 0x10b   :  { %v660_v16 = vmul.f32 0.5, %v659_v57  ;;  %v369_v55 = vmul.f32 %v327_v36, %v1314_v15  ;;  %v361_v17 = vmul.f32 %v303_v3, %v1314_v15  ;;  %v306_v12 = vpop.xlane.xlu2 %305 }
 0x10c   :  { %v581_v42 = vsub.f32 1.5, %v580_v50  ;;  %v362_v44 = vmul.f32 %v306_v12, %v1314_v15  ;;  %v652_v12 = vmul.f32 %v1563_v24, %v651_v45 }
 0x10d   :  { %v1603_v23 = vpop.eup %1015  ;;  %v661_v34 = vsub.f32 1.5, %v660_v16  ;;  %v1605_v61 = vadd.f32 1e-05, %v361_v17  ;;  %v1611_v57 = vadd.f32 1e-05, %v369_v55 }
 0x10e   :  { %v1613_v36 = vpop.eup %1017  ;;  %v582_v6 = vmul.f32 %v1576_v33, %v581_v42  ;;  %v488_v3 = vmul.f32 %v1603_v23, %v1580_v30  ;;  %v1631_v17 = vadd.f32 1e-05, %v362_v44  ;;  %vm494_vm4 = vweird.f32 %v1603_v23 }
 0x10f   :  { %v1619_v53 = vpop.eup %1019  ;;  %v662_v50 = vmul.f32 %v1584_v60, %v661_v34  ;;  %v418_v16 = vmul.f32 %v1613_v36, %v1582_v0  ;;  %1021 = vrsqrt.f32 %v1605_v61  ;;  %v409_v34 = vmul.f32 %v1598_v11, %v408_v18 }
 0x110   :  { %v498_v55 = vmul.f32 %v1619_v53, %v1589_v41  ;;  %1023 = vrsqrt.f32 %v1611_v57  ;;  %v489_v48 = vmul.f32 %v1603_v23, %v488_v3  ;;  %v586_v37 = vsel %vm1634_vm8, %v1576_v33, %v582_v6 }
 0x111   :  { %v419_v10 = vmul.f32 %v1613_v36, %v418_v16  ;;  %1025 = vrsqrt.f32 %v1631_v17  ;;  %v666_v63 = vsel %vm1647_vm11, %v1584_v60, %v662_v50  ;;  %v410_v3 = vmul.f32 0.5, %v409_v34  ;;  %vm1768_vm11 = vmor %vm493_vm1, %vm494_vm4 }
 0x112   :  { %v258_v29 = vpop.xlane.xlu0 %257  ;;  %v330_v43 = vpop.xlane.xlu1 %329  ;;  %v499_v56 = vmul.f32 %v1619_v53, %v498_v55  ;;  %v576_v33 = vsel %vm1655_vm12, %v1561_v4, %v572_v62  ;;  %v656_v60 = vsel %vm1669_vm13, %v1563_v24, %v652_v12  ;;  %v744_v55 = vmul.f32 %v586_v37, %v1340_v51 }
 0x113   :  { %v346_v45 = vmul.f32 %v258_v29, %v1314_v15  ;;  %v255_v18 = vpop.xlane.xlu2 %254  ;;  %v370_v2 = vmul.f32 %v330_v43, %v1314_v15  ;;  %v420_v52 = vmul.f32 0.5, %v419_v10  ;;  %v752_v42 = vmul.f32 %v666_v63, %v1337_v47 }
 0x114   :  { %v345_v43 = vmul.f32 %v255_v18, %v1314_v15  ;;  %v490_v10 = vmul.f32 0.5, %v489_v48  ;;  %v500_v62 = vmul.f32 0.5, %v499_v56  ;;  %v743_v44 = vmul.f32 %v576_v33, %v1322_v28 }
 0x115   :  { %v1674_v49 = vadd.f32 1e-05, %v346_v45  ;;  %v1683_v6 = vpop.eup %1021  ;;  %v1686_v50 = vadd.f32 1e-05, %v370_v2  ;;  %v751_v51 = vmul.f32 %v656_v60, %v1319_v27  ;;  %v411_v47 = vsub.f32 1.5, %v410_v3 }
 0x116   :  { %v1690_v34 = vpop.eup %1023  ;;  %v588_v4 = vmul.f32 %v1683_v6, %v1605_v61  ;;  %v1698_v12 = vadd.f32 1e-05, %v345_v43  ;;  %v421_v63 = vsub.f32 1.5, %v420_v52  ;;  %v767_v56 = vpack.c.bf16 %v744_v55, %v743_v44 }
 0x117   :  { %1027 = vrsqrt.f32 %v1674_v49  ;;  %v1696_v24 = vpop.eup %1025  ;;  %v771_v2 = vpack.c.bf16 %v752_v42, %v751_v51  ;;  %v491_v29 = vsub.f32 1.5, %v490_v10  ;;  %v501_v43 = vsub.f32 1.5, %v500_v62 }
 0x118   :  { %v598_v45 = vmul.f32 %v1696_v24, %v1631_v17  ;;  %1029 = vrsqrt.f32 %v1686_v50  ;;  %v589_v48 = vmul.f32 %v1683_v6, %v588_v4  ;;  %v668_v3 = vmul.f32 %v1690_v34, %v1611_v57  ;;  %985 = vmatmul.msk.bf16.vlgmr.msra.gmra.mxu2 %vm47_vm0, %v767_v56 }
 0x119   :  { %1031 = vrsqrt.f32 %v1698_v12  ;;  %989 = vmatmul.msk.bf16.vlgmr.msra.gmra.mxu3 %vm47_vm0, %v771_v2  ;;  %v412_v55 = vmul.f32 %v1598_v11, %v411_v47  ;;  %v422_v42 = vmul.f32 %v1613_v36, %v421_v63  ;;  %vm424_vm3 = vweird.f32 %v1613_v36 }
 0x11a   :  { %v309_v18 = vpop.xlane.xlu0 %308  ;;  %v279_v16 = vpop.xlane.xlu1 %278  ;;  %v599_v27 = vmul.f32 %v1696_v24, %v598_v45  ;;  %v590_v10 = vmul.f32 0.5, %v589_v48  ;;  %v502_v48 = vmul.f32 %v1619_v53, %v501_v43  ;;  %vm504_vm7 = vweird.f32 %v1619_v53  ;;  %vm1752_vm8 = vmor %vm423_vm2, %vm424_vm3 }
 0x11b   :  { %v282_v37 = vpop.xlane.xlu2 %281  ;;  %v363_v28 = vmul.f32 %v309_v18, %v1314_v15  ;;  %v353_v33 = vmul.f32 %v279_v16, %v1314_v15  ;;  %v492_v16 = vmul.f32 %v1603_v23, %v491_v29  ;;  %v669_v56 = vmul.f32 %v1690_v34, %v668_v3  ;;  %vm505_vm12 = vmor %vm503_vm5, %vm504_vm7 }
 0x11c   :  { %v354_v60 = vmul.f32 %v282_v37, %v1314_v15  ;;  %v600_v4 = vmul.f32 0.5, %v599_v27  ;;  %vm593_vm9 = vweird.f32 %v1605_v61  ;;  %vm594_vm10 = vweird.f32 %v1683_v6 }
 0x11d   :  { %v1710_v52 = vpop.eup %1027  ;;  %v1722_v62 = vadd.f32 1e-05, %v363_v28  ;;  %v1724_v44 = vadd.f32 1e-05, %v353_v33  ;;  %v416_v37 = vsel %vm1740_vm6, %v1598_v11, %v412_v55  ;;  %v591_v28 = vsub.f32 1.5, %v590_v10  ;;  %vm1820_vm2 = vmor %vm593_vm9, %vm594_vm10 }
 0x11e   :  { %v1726_v51 = vpop.eup %1029  ;;  %v438_v47 = vmul.f32 %v1710_v52, %v1674_v49  ;;  %v1732_v63 = vadd.f32 1e-05, %v354_v60  ;;  %v601_v43 = vsub.f32 1.5, %v600_v4  ;;  %v426_v3 = vsel %vm1752_vm8, %v1613_v36, %v422_v42 }
 0x11f   :  { %v1734_v45 = vpop.eup %1031  ;;  %1033 = vrsqrt.f32 %v1722_v62  ;;  %v678_v11 = vmul.f32 %v1726_v51, %v1686_v50  ;;  %v727_v55 = vmul.f32 %v416_v37, %v1332_v40  ;;  %v728_v10 = vmul.f32 %v426_v3, %v1350_v58 }
 0x120   :  { %v428_v54 = vmul.f32 %v1734_v45, %v1698_v12  ;;  %1035 = vrsqrt.f32 %v1724_v44  ;;  %v439_v30 = vmul.f32 %v1710_v52, %v438_v47  ;;  %v496_v36 = vsel %vm1768_vm11, %v1603_v23, %v492_v16 }
 0x121   :  { %1037 = vrsqrt.f32 %v1732_v63  ;;  %v506_v41 = vsel %vm505_vm12, %v1619_v53, %v502_v48  ;;  %v670_v42 = vmul.f32 0.5, %v669_v56  ;;  %vm604_vm13 = vweird.f32 %v1696_v24 }
 0x122   :  { %v336_v29 = vpop.xlane.xlu0 %335  ;;  %v312_v27 = vpop.xlane.xlu1 %311  ;;  %v429_v60 = vmul.f32 %v1734_v45, %v428_v54  ;;  %v735_v47 = vmul.f32 %v496_v36, %v1361_v8  ;;  %v759_v18 = vpack.c.bf16 %v728_v10, %v727_v55  ;;  %v736_v2 = vmul.f32 %v506_v41, %v1358_v9 }
 0x123   :  { %v333_v33 = vpop.xlane.xlu2 %332  ;;  %v372_v54 = vmul.f32 %v336_v29, %v1314_v15  ;;  %v364_v40 = vmul.f32 %v312_v27, %v1314_v15  ;;  %v592_v37 = vmul.f32 %v1683_v6, %v591_v28  ;;  %v602_v23 = vmul.f32 %v1696_v24, %v601_v43 }
 0x124   :  { %v430_v4 = vmul.f32 0.5, %v429_v60  ;;  %v440_v53 = vmul.f32 0.5, %v439_v30  ;;  %v679_v16 = vmul.f32 %v1726_v51, %v678_v11  ;;  %977 = vmatmul.msk.bf16.vlgmr.msra.gmra.mxu0 %vm47_vm0, %v759_v18  ;;  %v763_v8 = vpack.c.bf16 %v736_v2, %v735_v47 }
 0x125   :  { %v1796_v58 = vpop.eup %1033  ;;  %v1804_v56 = vadd.f32 1e-05, %v372_v54  ;;  %v1806_v9 = vadd.f32 1e-05, %v364_v40  ;;  %v371_v29 = vmul.f32 %v333_v33, %v1314_v15  ;;  %vm603_vm14 = vweird.f32 %v1631_v17 }
 0x126   :  { %v1801_v48 = vpop.eup %1035  ;;  %v431_v0 = vsub.f32 1.5, %v430_v4  ;;  %vm433_vm15 = vweird.f32 %v1698_v12  ;;  %v671_v3 = vsub.f32 1.5, %v670_v42  ;;  %vm674_vm1 = vweird.f32 %v1690_v34  ;;  %981 = vmatmul.msk.bf16.vlgmr.msra.gmra.mxu1 %vm47_vm0, %v763_v8  ;;  %vm1833_vm4 = vmor %vm603_vm14, %vm604_vm13 }
 0x127   :  { %v1809_v27 = vpop.eup %1037  ;;  %v508_v28 = vmul.f32 %v1801_v48, %v1724_v44  ;;  %vm443_vm3 = vweird.f32 %v1674_v49  ;;  %v608_v17 = vmul.f32 %v1796_v58, %v1722_v62  ;;  %1039 = vrsqrt.f32 %v1804_v56 }
 0x128   :  { %v518_v30 = vmul.f32 %v1809_v27, %v1732_v63  ;;  %v680_v11 = vmul.f32 0.5, %v679_v16  ;;  %vm434_vm5 = vweird.f32 %v1734_v45  ;;  %1041 = vrsqrt.f32 %v1806_v9 }
 0x129   :  { %v509_v60 = vmul.f32 %v1801_v48, %v508_v28  ;;  %vm673_vm6 = vweird.f32 %v1611_v57  ;;  %v441_v10 = vsub.f32 1.5, %v440_v53  ;;  %v1841_v36 = vadd.f32 1e-05, %v371_v29  ;;  %vm1867_vm9 = vmor %vm433_vm15, %vm434_vm5 }
 0x12a   :  { %v261_v43 = vpop.xlane.xlu1 %260  ;;  %v285_v55 = vpop.xlane.xlu0 %284  ;;  %v596_v41 = vsel %vm1820_vm2, %v1683_v6, %v592_v37  ;;  %v606_v42 = vsel %vm1833_vm4, %v1696_v24, %v602_v23  ;;  %vm683_vm7 = vweird.f32 %v1686_v50  ;;  %v432_v47 = vmul.f32 %v1734_v45, %v431_v0  ;;  %vm1904_vm13 = vmor %vm673_vm6, %vm674_vm1 }
 0x12b   :  { %v264_v4 = vpop.xlane.xlu2 %263  ;;  %v519_v18 = vmul.f32 %v1809_v27, %v518_v30  ;;  %v745_v2 = vmul.f32 %v596_v41, %v1371_v21  ;;  %v746_v54 = vmul.f32 %v606_v42, %v1382_v14  ;;  %v672_v40 = vmul.f32 %v1690_v34, %v671_v3 }
 0x12c   :  { %v609_v53 = vmul.f32 %v1796_v58, %v608_v17  ;;  %1043 = vrsqrt.f32 %v1841_v36  ;;  %v355_v6 = vmul.f32 %v285_v55, %v1314_v15  ;;  %v681_v24 = vsub.f32 1.5, %v680_v11 }
 0x12d   :  { %v510_v37 = vmul.f32 0.5, %v509_v60  ;;  %v768_v23 = vpack.c.bf16 %v746_v54, %v745_v2  ;;  %v347_v16 = vmul.f32 %v261_v43, %v1314_v15  ;;  %v1859_v8 = vpop.eup %1039  ;;  %v442_v29 = vmul.f32 %v1710_v52, %v441_v10 }
 0x12e   :  { %vm444_vm8 = vweird.f32 %v1710_v52  ;;  %v1871_v14 = vadd.f32 1e-05, %v355_v6  ;;  %v348_v0 = vmul.f32 %v264_v4, %v1314_v15  ;;  %v1874_v28 = vpop.eup %1041  ;;  %vm684_vm10 = vweird.f32 %v1726_v51 }
 0x12f   :  { %v520_v43 = vmul.f32 0.5, %v519_v18  ;;  %986 = vmatmul.msk.bf16.gmra.mxu2 %vm47_vm0, %v768_v23  ;;  %v1878_v3 = vadd.f32 1e-05, %v347_v16  ;;  %v436_v12 = vsel %vm1867_vm9, %v1734_v45, %v432_v47  ;;  %v610_v33 = vmul.f32 0.5, %v609_v53  ;;  %vm445_vm12 = vmor %vm443_vm3, %vm444_vm8 }
 0x130   :  { %vm513_vm11 = vweird.f32 %v1724_v44  ;;  %v618_v17 = vmul.f32 %v1874_v28, %v1806_v9  ;;  %1045 = vrsqrt.f32 %v1871_v14  ;;  %v682_v30 = vmul.f32 %v1726_v51, %v681_v24  ;;  %vm685_vm15 = vmor %vm683_vm7, %vm684_vm10 }
 0x131   :  { %v511_v61 = vsub.f32 1.5, %v510_v37  ;;  %v698_v11 = vmul.f32 %v1859_v8, %v1804_v56  ;;  %1047 = vrsqrt.f32 %v1878_v3  ;;  %v1896_v10 = vadd.f32 1e-05, %v348_v0 }
 0x132   :  { %v288_v45 = vpop.xlane.xlu1 %287  ;;  %v1893_v60 = vpop.eup %1043  ;;  %v619_v55 = vmul.f32 %v1874_v28, %v618_v17  ;;  %v446_v41 = vsel %vm445_vm12, %v1710_v52, %v442_v29  ;;  %v729_v49 = vmul.f32 %v436_v12, %v1403_v20  ;;  %v521_v4 = vsub.f32 1.5, %v520_v43 }
 0x133   :  { %vm523_vm14 = vweird.f32 %v1732_v63  ;;  %v688_v47 = vmul.f32 %v1893_v60, %v1841_v36  ;;  %v730_v18 = vmul.f32 %v446_v41, %v1400_v7  ;;  %v318_v2 = vpop.xlane.xlu0 %317  ;;  %v611_v20 = vsub.f32 1.5, %v610_v33  ;;  %v315_v52 = vpop.xlane.xlu2 %314 }
 0x134   :  { %vm514_vm1 = vweird.f32 %v1801_v48  ;;  %1049 = vrsqrt.f32 %v1896_v10  ;;  %v676_v57 = vsel %vm1904_vm13, %v1690_v34, %v672_v40  ;;  %v512_v54 = vmul.f32 %v1801_v48, %v511_v61 }
 0x135   :  { %v620_v53 = vmul.f32 0.5, %v619_v55  ;;  %v760_v7 = vpack.c.bf16 %v730_v18, %v729_v49  ;;  %v686_v6 = vsel %vm685_vm15, %v1726_v51, %v682_v30  ;;  %vm613_vm2 = vweird.f32 %v1722_v62  ;;  %vm1946_vm6 = vmor %vm513_vm11, %vm514_vm1 }
 0x136   :  { %v1923_v24 = vpop.eup %1045  ;;  %v699_v50 = vmul.f32 %v1859_v8, %v698_v11  ;;  %v753_v37 = vmul.f32 %v676_v57, %v1379_v39  ;;  %v754_v23 = vmul.f32 %v686_v6, %v1392_v46  ;;  %v356_v16 = vmul.f32 %v288_v45, %v1314_v15 }
 0x137   :  { %v1930_v34 = vpop.eup %1047  ;;  %v522_v40 = vmul.f32 %v1809_v27, %v521_v4  ;;  %vm524_vm3 = vweird.f32 %v1809_v27  ;;  %v689_v51 = vmul.f32 %v1893_v60, %v688_v47  ;;  %v528_v29 = vmul.f32 %v1923_v24, %v1871_v14  ;;  %978 = vmatmul.msk.bf16.gmra.mxu0 %vm47_vm0, %v760_v7 }
 0x138   :  { %vm614_vm4 = vweird.f32 %v1796_v58  ;;  %vm623_vm5 = vweird.f32 %v1806_v9  ;;  %v448_v39 = vmul.f32 %v1930_v34, %v1878_v3  ;;  %v772_v46 = vpack.c.bf16 %v754_v23, %v753_v37  ;;  %vm1961_vm7 = vmor %vm523_vm14, %vm524_vm3 }
 0x139   :  { %v621_v0 = vsub.f32 1.5, %v620_v53  ;;  %v529_v43 = vmul.f32 %v1923_v24, %v528_v29  ;;  %v1951_v12 = vadd.f32 1e-05, %v356_v16  ;;  %v366_v33 = vmul.f32 %v318_v2, %v1314_v15  ;;  %vm1995_vm13 = vmor %vm613_vm2, %vm614_vm4 }
 0x13a   :  { %v1954_v17 = vpop.eup %1049  ;;  %v612_v30 = vmul.f32 %v1796_v58, %v611_v20  ;;  %v700_v61 = vmul.f32 0.5, %v699_v50  ;;  %990 = vmatmul.msk.bf16.gmra.mxu3 %vm47_vm0, %v772_v46  ;;  %v365_v11 = vmul.f32 %v315_v52, %v1314_v15  ;;  %v516_v45 = vsel %vm1946_vm6, %v1801_v48, %v512_v54  ;;  %v339_v42 = vpop.xlane.xlu1 %338 }
 0x13b   :  { %v690_v55 = vmul.f32 0.5, %v689_v51  ;;  %v449_v41 = vmul.f32 %v1930_v34, %v448_v39  ;;  %v458_v49 = vmul.f32 %v1954_v17, %v1896_v10  ;;  %v526_v63 = vsel %vm1961_vm7, %v1809_v27, %v522_v40  ;;  %v267_v20 = vpop.xlane.xlu0 %266  ;;  %v342_v52 = vpop.xlane.xlu2 %341 }
 0x13c   :  { %vm703_vm8 = vweird.f32 %v1804_v56  ;;  %vm624_vm9 = vweird.f32 %v1874_v28  ;;  %v530_v4 = vmul.f32 0.5, %v529_v43  ;;  %1051 = vrsqrt.f32 %v1951_v12 }
 0x13d   :  { %v1979_v47 = vadd.f32 1e-05, %v366_v33  ;;  %v622_v48 = vmul.f32 %v1874_v28, %v621_v0  ;;  %vm693_vm10 = vweird.f32 %v1841_v36  ;;  %v459_v18 = vmul.f32 %v1954_v17, %v458_v49  ;;  %vm625_vm14 = vmor %vm623_vm5, %vm624_vm9 }
 0x13e   :  { %v1984_v2 = vadd.f32 1e-05, %v365_v11  ;;  %v737_v27 = vmul.f32 %v516_v45, %v1413_v5  ;;  %vm704_vm11 = vweird.f32 %v1859_v8  ;;  %vm694_vm12 = vweird.f32 %v1893_v60 }
 0x13f   :  { %1053 = vrsqrt.f32 %v1979_v47  ;;  %v738_v57 = vmul.f32 %v526_v63, %v1424_v26  ;;  %v701_v53 = vsub.f32 1.5, %v700_v61  ;;  %v691_v5 = vsub.f32 1.5, %v690_v55  ;;  %vm2037_vm2 = vmor %vm703_vm8, %vm704_vm11 }
 0x140   :  { %v450_v7 = vmul.f32 0.5, %v449_v41  ;;  %1055 = vrsqrt.f32 %v1984_v2  ;;  %v531_v26 = vsub.f32 1.5, %v530_v4  ;;  %v373_v50 = vmul.f32 %v339_v42, %v1314_v15  ;;  %vm695_vm5 = vmor %vm693_vm10, %vm694_vm12 }
 0x141   :  { %v764_v6 = vpack.c.bf16 %v738_v57, %v737_v27  ;;  %v349_v62 = vmul.f32 %v267_v20, %v1314_v15  ;;  %v460_v37 = vmul.f32 0.5, %v459_v18  ;;  %v374_v23 = vmul.f32 %v342_v52, %v1314_v15 }
 0x142   :  { %v616_v16 = vsel %vm1995_vm13, %v1796_v58, %v612_v30  ;;  %v626_v40 = vsel %vm625_vm14, %v1874_v28, %v622_v48  ;;  %v2011_v51 = vpop.eup %1051  ;;  %v2014_v9 = vadd.f32 1e-05, %v373_v50  ;;  %v702_v21 = vmul.f32 %v1859_v8, %v701_v53  ;;  %v270_v45 = vpop.xlane.xlu1 %269 }
 0x143   :  { %982 = vmatmul.msk.bf16.gmra.mxu1 %vm47_vm0, %v764_v6  ;;  %v2016_v29 = vadd.f32 1e-05, %v349_v62  ;;  %v747_v39 = vmul.f32 %v616_v16, %v1421_v13  ;;  %v748_v46 = vmul.f32 %v626_v40, %v1434_v35  ;;  %v692_v0 = vmul.f32 %v1893_v60, %v691_v5  ;;  %v294_v42 = vpop.xlane.xlu0 %293  ;;  %v291_v20 = vpop.xlane.xlu2 %290 }
 0x144   :  { %vm453_vm15 = vweird.f32 %v1878_v3  ;;  %v538_v58 = vmul.f32 %v2011_v51, %v1951_v12  ;;  %v2025_v28 = vadd.f32 1e-05, %v374_v23  ;;  %v451_v33 = vsub.f32 1.5, %v450_v7 }
 0x145   :  { %v2027_v43 = vpop.eup %1053  ;;  %vm454_vm1 = vweird.f32 %v1930_v34  ;;  %1057 = vrsqrt.f32 %v2014_v9  ;;  %v769_v13 = vpack.c.bf16 %v748_v46, %v747_v39  ;;  %vm534_vm3 = vweird.f32 %v1923_v24  ;;  %v2458_v39 = vld [vmem:[#allocation6_spill] sm:$0xff] }
 0x146   :  { %v2031_v35 = vpop.eup %1055  ;;  %v461_v44 = vsub.f32 1.5, %v460_v37  ;;  %vm463_vm4 = vweird.f32 %v1896_v10  ;;  %v539_v61 = vmul.f32 %v2011_v51, %v538_v58  ;;  %v638_v11 = vmul.f32 %v2027_v43, %v1979_v47  ;;  %vm2092_vm13 = vmor %vm453_vm15, %vm454_vm1 }
 0x147   :  { %1059 = vrsqrt.f32 %v2016_v29  ;;  %v2052_v56 = vmul.f32 %v1923_v24, %v531_v26  ;;  %vm464_vm6 = vweird.f32 %v1954_v17  ;;  %v628_v55 = vmul.f32 %v2031_v35, %v1984_v2  ;;  %987 = vmatmul.msk.bf16.gmra.mxu2 %vm47_vm0, %v769_v13 }
 0x148   :  { %1061 = vrsqrt.f32 %v2025_v28  ;;  %vm533_vm7 = vweird.f32 %v1871_v14  ;;  %v540_v41 = vmul.f32 0.5, %v539_v61  ;;  %v639_v49 = vmul.f32 %v2027_v43, %v638_v11  ;;  %vm2112_vm15 = vmor %vm463_vm4, %vm464_vm6 }
 0x149   :  { %v696_v36 = vsel %vm695_vm5, %v1893_v60, %v692_v0  ;;  %v706_v63 = vsel %vm2037_vm2, %v1859_v8, %v702_v21  ;;  %vm543_vm8 = vweird.f32 %v1951_v12  ;;  %v629_v4 = vmul.f32 %v2031_v35, %v628_v55  ;;  %vm2131_vm4 = vmor %vm533_vm7, %vm534_vm3 }
 0x14a   :  { %v755_v48 = vmul.f32 %v696_v36, %v1445_v32  ;;  %v756_v18 = vmul.f32 %v706_v63, %v1442_v19  ;;  %v350_v27 = vmul.f32 %v270_v45, %v1314_v15  ;;  %v452_v57 = vmul.f32 %v1930_v34, %v451_v33 }
 0x14b   :  { %v462_v60 = vmul.f32 %v1954_v17, %v461_v44  ;;  %v541_v52 = vsub.f32 1.5, %v540_v41  ;;  %v640_v54 = vmul.f32 0.5, %v639_v49  ;;  %v2072_v53 = vpop.eup %1057  ;;  %vm643_vm9 = vweird.f32 %v1979_v47 }
 0x14c   :  { %v630_v8 = vmul.f32 0.5, %v629_v4  ;;  %v773_v5 = vpack.c.bf16 %v756_v18, %v755_v48  ;;  %v2075_v7 = vadd.f32 1e-05, %v350_v27  ;;  %v358_v32 = vmul.f32 %v294_v42, %v1314_v15 }
 0x14d   :  { %v2078_v19 = vpop.eup %1059  ;;  %vm544_vm10 = vweird.f32 %v2011_v51  ;;  %vm644_vm11 = vweird.f32 %v2027_v43  ;;  %vm633_vm12 = vweird.f32 %v1984_v2  ;;  %v708_v26 = vmul.f32 %v2072_v53, %v2014_v9 }
 0x14e   :  { %v357_v6 = vmul.f32 %v291_v20, %v1314_v15  ;;  %v2086_v50 = vpop.eup %1061  ;;  %v641_v37 = vsub.f32 1.5, %v640_v54  ;;  %vm634_vm14 = vweird.f32 %v2031_v35  ;;  %vm713_vm2 = vweird.f32 %v2014_v9  ;;  %991 = vmatmul.msk.bf16.gmra.mxu3 %vm47_vm0, %v773_v5  ;;  %vm2142_vm5 = vmor %vm543_vm8, %vm544_vm10 }
 0x14f   :  { %v468_v23 = vmul.f32 %v2078_v19, %v2016_v29  ;;  %1063 = vrsqrt.f32 %v2075_v7  ;;  %v631_v15 = vsub.f32 1.5, %v630_v8  ;;  %v709_v16 = vmul.f32 %v2072_v53, %v708_v26  ;;  %vm2161_vm6 = vmor %vm643_vm9, %vm644_vm11 }
 0x150   :  { %v718_v3 = vmul.f32 %v2086_v50, %v2025_v28  ;;  %v456_v40 = vsel %vm2092_vm13, %v1930_v34, %v452_v57  ;;  %v542_v46 = vmul.f32 %v2011_v51, %v541_v52  ;;  %vm723_vm1 = vweird.f32 %v2025_v28  ;;  %vm635_vm8 = vmor %vm633_vm12, %vm634_vm14 }
 0x151   :  { %v469_v21 = vmul.f32 %v2078_v19, %v468_v23  ;;  %v2119_v0 = vadd.f32 1e-05, %v358_v32  ;;  %v710_v58 = vmul.f32 0.5, %v709_v16  ;;  %v2122_v34 = vadd.f32 1e-05, %v357_v6  ;;  %v2455_v32 = vld [vmem:[#allocation3_spill] sm:$0xff] }
 0x152   :  { %v719_v33 = vmul.f32 %v2086_v50, %v718_v3  ;;  %v466_v10 = vsel %vm2112_vm15, %v1954_v17, %v462_v60  ;;  %v642_v30 = vmul.f32 %v2027_v43, %v641_v37  ;;  %v731_v61 = vmul.f32 %v456_v40, %v1455_v59 }
 0x153   :  { %v470_v44 = vmul.f32 0.5, %v469_v21  ;;  %1065 = vrsqrt.f32 %v2119_v0  ;;  %v632_v14 = vmul.f32 %v2031_v35, %v631_v15  ;;  %v711_v11 = vsub.f32 1.5, %v710_v58  ;;  %v2459_v58 = vld [vmem:[#allocation4_spill] sm:$0xff] }
 0x154   :  { %v720_v45 = vmul.f32 0.5, %v719_v33  ;;  %1067 = vrsqrt.f32 %v2122_v34  ;;  %vm714_vm3 = vweird.f32 %v2072_v53  ;;  %v732_v41 = vmul.f32 %v466_v10, %v1466_v38 }
 0x155   :  { %v1064_v55 = vpop.eup %1063  ;;  %v536_v59 = vsel %vm2131_vm4, %v1923_v24, %v2052_v56  ;;  %v546_v12 = vsel %vm2142_vm5, %v2011_v51, %v542_v46  ;;  %v712_v36 = vmul.f32 %v2072_v53, %v711_v11  ;;  %vm724_vm7 = vweird.f32 %v2086_v50  ;;  %vm2176_vm9 = vmor %vm713_vm2, %vm714_vm3 }
 0x156   :  { %v721_v38 = vsub.f32 1.5, %v720_v45  ;;  %v478_v63 = vmul.f32 %v1064_v55, %v2075_v7  ;;  %v471_v24 = vsub.f32 1.5, %v470_v44  ;;  %v761_v51 = vpack.c.bf16 %v732_v41, %v731_v61  ;;  %vm2187_vm10 = vmor %vm723_vm1, %vm724_vm7  ;;  %v2460_v44 = vld [vmem:[#allocation7_spill] sm:$0xff]  ;;  %v2461_v61 = vld [vmem:[#allocation5_spill] sm:$0xff] }
 0x157   :  { %v739_v47 = vmul.f32 %v536_v59, %v1463_v25  ;;  %v740_v56 = vmul.f32 %v546_v12, %v1476_v22  ;;  %v636_v18 = vsel %vm635_vm8, %v2031_v35, %v632_v14  ;;  %v646_v2 = vsel %vm2161_vm6, %v2027_v43, %v642_v30 }
 0x158   :  { %v722_v4 = vmul.f32 %v2086_v50, %v721_v38  ;;  %v479_v48 = vmul.f32 %v1064_v55, %v478_v63  ;;  %979 = vmatmul.msk.bf16.gmra.mxu0 %vm47_vm0, %v761_v51  ;;  %v749_v9 = vmul.f32 %v636_v18, %v1484_v31  ;;  %v750_v20 = vmul.f32 %v646_v2, %v1490_v1  ;;  %v2454_v1 = vld [vmem:[#allocation2_spill] sm:$0xff] }
 0x159   :  { %v1066_v27 = vpop.eup %1065  ;;  %v765_v22 = vpack.c.bf16 %v740_v56, %v739_v47  ;;  %v716_v35 = vsel %vm2176_vm9, %v2072_v53, %v712_v36  ;;  %vm474_vm11 = vweird.f32 %v2078_v19  ;;  %vm484_vm12 = vweird.f32 %v1064_v55 }
 0x15a   :  { %v1068_v57 = vpop.eup %1067  ;;  %v480_v43 = vmul.f32 0.5, %v479_v48  ;;  %v558_v28 = vmul.f32 %v1066_v27, %v2119_v0  ;;  %v726_v60 = vsel %vm2187_vm10, %v2086_v50, %v722_v4  ;;  %v770_v31 = vpack.c.bf16 %v750_v20, %v749_v9 }
 0x15b   :  { %v548_v52 = vmul.f32 %v1068_v57, %v2122_v34  ;;  %983 = vmatmul.msk.bf16.gmra.mxu1 %vm47_vm0, %v765_v22  ;;  %v757_v54 = vmul.f32 %v716_v35, %v2454_v1  ;;  %v472_v53 = vmul.f32 %v2078_v19, %v471_v24  ;;  %v758_v26 = vmul.f32 %v726_v60, %v2455_v32 }
 0x15c   :  { %v481_v8 = vsub.f32 1.5, %v480_v43  ;;  %v559_v5 = vmul.f32 %v1066_v27, %v558_v28  ;;  %vm473_vm13 = vweird.f32 %v2016_v29  ;;  %988 = vmatmul.msk.bf16.gmra.mxu2 %vm47_vm0, %v770_v31  ;;  %vm483_vm2 = vweird.f32 %v2075_v7 }
 0x15d   :  { %v549_v6 = vmul.f32 %v1068_v57, %v548_v52  ;;  %vm2211_vm14 = vmor %vm473_vm13, %vm474_vm11  ;;  %v774_v23 = vpack.c.bf16 %v758_v26, %v757_v54  ;;  %vm564_vm1 = vweird.f32 %v1066_v27  ;;  %vm554_vm4 = vweird.f32 %v1068_v57 }
 0x15e   :  { %v482_v62 = vmul.f32 %v1064_v55, %v481_v8  ;;  %v560_v37 = vmul.f32 0.5, %v559_v5  ;;  %vm485_vm15 = vmor %vm483_vm2, %vm484_vm12  ;;  %v476_v29 = vsel %vm2211_vm14, %v2078_v19, %v472_v53  ;;  %vm563_vm5 = vweird.f32 %v2119_v0  ;;  %v2232_v0 = vld [vmem:[%s2395_s2] ss:$0 sm:$0xff] }
 0x15f   :  { %v550_v15 = vmul.f32 0.5, %v549_v6  ;;  %992 = vmatmul.msk.bf16.gmra.mxu3 %vm47_vm0, %v774_v23  ;;  %vm565_vm3 = vmor %vm563_vm5, %vm564_vm1  ;;  %vm553_vm6 = vweird.f32 %v2122_v34  ;;  %v733_v33 = vmul.f32 %v476_v29, %v2459_v58  ;;  %vm932_vm8 = vcmask 523264  }
 0x160   :  { %v561_v16 = vsub.f32 1.5, %v560_v37  ;;  %v486_v3 = vsel %vm485_vm15, %v1064_v55, %v482_v62  ;;  %vm555_vm7 = vmor %vm553_vm6, %vm554_vm4 }
 0x161   :  { %v551_v40 = vsub.f32 1.5, %v550_v15  ;;  %v734_v46 = vmul.f32 %v486_v3, %v2458_v39 }
 0x162   :  { %v562_v21 = vmul.f32 %v1066_v27, %v561_v16 }
 0x163   :  { %v552_v7 = vmul.f32 %v1068_v57, %v551_v40  ;;  %v762_v13 = vpack.c.bf16 %v734_v46, %v733_v33 }
 0x164   :  { %v566_v10 = vsel %vm565_vm3, %v1066_v27, %v562_v21 }
 0x165   :  { %v556_v30 = vsel %vm555_vm7, %v1068_v57, %v552_v7  ;;  %v742_v19 = vmul.f32 %v566_v10, %v2460_v44 }
 0x166   :  { %v741_v17 = vmul.f32 %v556_v30, %v2461_v61 }
 0x168   :  { %v766_v14 = vpack.c.bf16 %v742_v19, %v741_v17  ;;  %980 = vmatmul.msk.bf16.gmra.mxu0 %vm47_vm0, %v762_v13 }
 0x16b   :  { %984 = vmatmul.msk.bf16.gmra.mxu1 %vm47_vm0, %v766_v14 }
 0x19b   :  { %v892_v34 = vpop.f32.mrf.mxu2 }
 0x19c   :  { %v912_v11 = vpop.f32.mrf.mxu3  ;;  %v893_v45 = vadd.f32 %v2232_v0, %v892_v34 }
 0x19d   :  { %v913_v55 = vadd.f32 %v2232_v0, %v912_v11 }
 0x19e   :  { %949 = vst.msk [vmem:[%s2397_s3 + $0x80] sm:$0xff] %vm932_vm8, %v893_v45 }
 0x19f   :  { %957 = vst.msk [vmem:[%s2397_s3 + $0xc0] sm:$0xff] %vm932_vm8, %v913_v55 }
 0x1a1   :  { %v852_v41 = vpop.f32.mrf.mxu0 }
 0x1a2   :  { %v853_v59 = vadd.f32 %v2232_v0, %v852_v41 }
 0x1a3   :  { %v872_v12 = vpop.f32.mrf.mxu1  ;;  %v894_v49 = vpop.f32.mrf.mxu2 }
 0x1a4   :  { %933 = vst.msk [vmem:[%s2397_s3] sm:$0xff] %vm932_vm8, %v853_v59  ;;  %v873_v36 = vadd.f32 %v2232_v0, %v872_v12  ;;  %v895_v38 = vadd.f32 %v2232_v0, %v894_v49  ;;  %v914_v63 = vpop.f32.mrf.mxu3 }
 0x1a5   :  { %v915_v24 = vadd.f32 %v2232_v0, %v914_v63 }
 0x1a6   :  { %941 = vst.msk [vmem:[%s2397_s3 + $0x40] sm:$0xff] %vm932_vm8, %v873_v36 }
 0x1a7   :  { %950 = vst.msk [vmem:[%s2397_s3 + $0x88] sm:$0xff] %vm932_vm8, %v895_v38 }
 0x1a8   :  { %958 = vst.msk [vmem:[%s2397_s3 + $0xc8] sm:$0xff] %vm932_vm8, %v915_v24 }
 0x1a9   :  { %v854_v51 = vpop.f32.mrf.mxu0 }
 0x1aa   :  { %v855_v47 = vadd.f32 %v2232_v0, %v854_v51 }
 0x1ab   :  { %v874_v56 = vpop.f32.mrf.mxu1 }
 0x1ac   :  { %934 = vst.msk [vmem:[%s2397_s3 + $0x8] sm:$0xff] %vm932_vm8, %v855_v47  ;;  %v875_v42 = vadd.f32 %v2232_v0, %v874_v56 }
 0x1ae   :  { %942 = vst.msk [vmem:[%s2397_s3 + $0x48] sm:$0xff] %vm932_vm8, %v875_v42 }
 0x1b2   :  { %v897_v4 = vpop.f32.mrf.mxu2 }
 0x1b3   :  { %v898_v48 = vadd.f32 %v2232_v0, %v897_v4 }
 0x1b4   :  { %v857_v18 = vpop.f32.mrf.mxu0 }
 0x1b5   :  { %951 = vst.msk [vmem:[%s2397_s3 + $0x90] sm:$0xff] %vm932_vm8, %v898_v48  ;;  %v858_v2 = vadd.f32 %v2232_v0, %v857_v18 }
 0x1b7   :  { %935 = vst.msk [vmem:[%s2397_s3 + $0x10] sm:$0xff] %vm932_vm8, %v858_v2 }
 0x1ba   :  { %v899_v27 = vpop.f32.mrf.mxu2 }
 0x1bb   :  { %v900_v25 = vadd.f32 %v2232_v0, %v899_v27 }
 0x1bc   :  { %v859_v22 = vpop.f32.mrf.mxu0 }
 0x1bd   :  { %952 = vst.msk [vmem:[%s2397_s3 + $0x98] sm:$0xff] %vm932_vm8, %v900_v25  ;;  %v917_v9 = vpop.f32.mrf.mxu3  ;;  %v860_v20 = vadd.f32 %v2232_v0, %v859_v22 }
 0x1be   :  { %v918_v35 = vadd.f32 %v2232_v0, %v917_v9 }
 0x1bf   :  { %936 = vst.msk [vmem:[%s2397_s3 + $0x18] sm:$0xff] %vm932_vm8, %v860_v20 }
 0x1c0   :  { %v877_v57 = vpop.f32.mrf.mxu1  ;;  %959 = vst.msk [vmem:[%s2397_s3 + $0xd0] sm:$0xff] %vm932_vm8, %v918_v35 }
 0x1c1   :  { %v878_v43 = vadd.f32 %v2232_v0, %v877_v57 }
 0x1c3   :  { %943 = vst.msk [vmem:[%s2397_s3 + $0x50] sm:$0xff] %vm932_vm8, %v878_v43 }
 0x1c5   :  { %v919_v28 = vpop.f32.mrf.mxu3 }
 0x1c6   :  { %v920_v60 = vadd.f32 %v2232_v0, %v919_v28 }
 0x1c8   :  { %v879_v52 = vpop.f32.mrf.mxu1  ;;  %960 = vst.msk [vmem:[%s2397_s3 + $0xd8] sm:$0xff] %vm932_vm8, %v920_v60 }
 0x1c9   :  { %v880_v31 = vadd.f32 %v2232_v0, %v879_v52 }
 0x1ca   :  { %v902_v1 = vpop.f32.mrf.mxu2 }
 0x1cb   :  { %944 = vst.msk [vmem:[%s2397_s3 + $0x58] sm:$0xff] %vm932_vm8, %v880_v31  ;;  %v903_v54 = vadd.f32 %v2232_v0, %v902_v1 }
 0x1cd   :  { %953 = vst.msk [vmem:[%s2397_s3 + $0xa0] sm:$0xff] %vm932_vm8, %v903_v54 }
 0x1d1   :  { %v922_v53 = vpop.f32.mrf.mxu3 }
 0x1d2   :  { %v923_v8 = vadd.f32 %v2232_v0, %v922_v53  ;;  %v904_v5 = vpop.f32.mrf.mxu2 }
 0x1d3   :  { %v905_v32 = vadd.f32 %v2232_v0, %v904_v5 }
 0x1d4   :  { %961 = vst.msk [vmem:[%s2397_s3 + $0xe0] sm:$0xff] %vm932_vm8, %v923_v8 }
 0x1d5   :  { %v862_v26 = vpop.f32.mrf.mxu0  ;;  %954 = vst.msk [vmem:[%s2397_s3 + $0xa8] sm:$0xff] %vm932_vm8, %v905_v32 }
 0x1d6   :  { %v863_v6 = vadd.f32 %v2232_v0, %v862_v26 }
 0x1d8   :  { %v882_v50 = vpop.f32.mrf.mxu1  ;;  %937 = vst.msk [vmem:[%s2397_s3 + $0x20] sm:$0xff] %vm932_vm8, %v863_v6 }
 0x1d9   :  { %v883_v62 = vadd.f32 %v2232_v0, %v882_v50  ;;  %v924_v37 = vpop.f32.mrf.mxu3 }
 0x1da   :  { %v925_v23 = vadd.f32 %v2232_v0, %v924_v37 }
 0x1db   :  { %945 = vst.msk [vmem:[%s2397_s3 + $0x60] sm:$0xff] %vm932_vm8, %v883_v62 }
 0x1dc   :  { %962 = vst.msk [vmem:[%s2397_s3 + $0xe8] sm:$0xff] %vm932_vm8, %v925_v23 }
 0x1dd   :  { %v864_v15 = vpop.f32.mrf.mxu0 }
 0x1de   :  { %v865_v16 = vadd.f32 %v2232_v0, %v864_v15 }
 0x1df   :  { %v907_v29 = vpop.f32.mrf.mxu2 }
 0x1e0   :  { %v884_v3 = vpop.f32.mrf.mxu1  ;;  %938 = vst.msk [vmem:[%s2397_s3 + $0x28] sm:$0xff] %vm932_vm8, %v865_v16  ;;  %v908_v40 = vadd.f32 %v2232_v0, %v907_v29 }
 0x1e1   :  { %v885_v39 = vadd.f32 %v2232_v0, %v884_v3 }
 0x1e2   :  { %955 = vst.msk [vmem:[%s2397_s3 + $0xb0] sm:$0xff] %vm932_vm8, %v908_v40  ;;  %v927_v46 = vpop.f32.mrf.mxu3 }
 0x1e3   :  { %946 = vst.msk [vmem:[%s2397_s3 + $0x68] sm:$0xff] %vm932_vm8, %v885_v39  ;;  %v928_v21 = vadd.f32 %v2232_v0, %v927_v46 }
 0x1e5   :  { %963 = vst.msk [vmem:[%s2397_s3 + $0xf0] sm:$0xff] %vm932_vm8, %v928_v21  ;;  %v867_v7 = vpop.f32.mrf.mxu0 }
 0x1e6   :  { %v868_v58 = vadd.f32 %v2232_v0, %v867_v7 }
 0x1e7   :  { %v909_v33 = vpop.f32.mrf.mxu2 }
 0x1e8   :  { %v887_v10 = vpop.f32.mrf.mxu1  ;;  %v910_v13 = vadd.f32 %v2232_v0, %v909_v33  ;;  %939 = vst.msk [vmem:[%s2397_s3 + $0x30] sm:$0xff] %vm932_vm8, %v868_v58 }
 0x1e9   :  { %v888_v30 = vadd.f32 %v2232_v0, %v887_v10 }
 0x1ea   :  { %956 = vst.msk [vmem:[%s2397_s3 + $0xb8] sm:$0xff] %vm932_vm8, %v910_v13  ;;  %v929_v44 = vpop.f32.mrf.mxu3 }
 0x1eb   :  { %947 = vst.msk [vmem:[%s2397_s3 + $0x70] sm:$0xff] %vm932_vm8, %v888_v30  ;;  %v930_v19 = vadd.f32 %v2232_v0, %v929_v44 }
 0x1ed   :  { %964 = vst.msk [vmem:[%s2397_s3 + $0xf8] sm:$0xff] %vm932_vm8, %v930_v19  ;;  %v869_v61 = vpop.f32.mrf.mxu0 }
 0x1ee   :  { %v870_v17 = vadd.f32 %v2232_v0, %v869_v61 }
 0x1f0   :  { %v889_v14 = vpop.f32.mrf.mxu1  ;;  %940 = vst.msk [vmem:[%s2397_s3 + $0x38] sm:$0xff] %vm932_vm8, %v870_v17 }
 0x1f1   :  { %v890_v34 = vadd.f32 %v2232_v0, %v889_v14 }
 0x1f3   :  { %948 = vst.msk [vmem:[%s2397_s3 + $0x78] sm:$0xff] %vm932_vm8, %v890_v34 }

</bundles_post_ra>
